<compile_context>
chip_gen: v7x
topology: tpu7x:2x2x1
jax: 0.10.0
libtpu: 0.0.40
codegen_flags: <defaults>
</compile_context>

<pallas_src>
import functools
import math

import jax
import jax.numpy as jnp
from jax.experimental import pallas as pl
from jax.experimental.pallas import tpu as pltpu


# ---------------------------------------------------------------------------
# Pallas kernel
# ---------------------------------------------------------------------------
def _decoder_kernel(T, H, h0_ref, wg_ref, bias_ref, wo_ref, out_ref, hn_ref, scr):
    """Zero-input bidirectional GRU + Linear(2H -> H), fully lane-fused.

    h (1, 4H) lane layout: [ fwd b0 | fwd b1 | bwd b0 | bwd b1 ].
    Per step: ONE bf16 (1,4H)x(4H,12H) MXU dot (gates r|z|n fused along lanes)
    + elementwise gate math in f32.  Projection: ONE (T,8H)x(8H,4H) MXU dot.
    """
    L = 4 * H                                  # fused lane width (=128 for H=32)

    # Bias block (2, 3L):
    #   row 0 = [ b_r | b_z | b_hn ]   (input biases for r/z folded in: x == 0)
    #   row 1 = [ b_in | b_out_pad | 0 ]
    b_gates = bias_ref[0:1, :]                 # (1, 3L)
    b_in = bias_ref[1:2, 0:L]                  # (1, L)

    h = h0_ref[...]                            # (1, L), f32 carried state

    # Static unroll: T is small & known -> straight-line code, full cross-step
    # visibility for the scheduler, no loop machinery.
    for i in range(T):
        # One fused gate matmul per step; bf16 operands, f32 accumulation.
        s = jnp.dot(h.astype(jnp.bfloat16), wg_ref[...],
                    preferred_element_type=jnp.float32) + b_gates      # (1, 3L)
        r = jax.nn.sigmoid(s[:, 0:L])
        z = jax.nn.sigmoid(s[:, L:2 * L])
        n = jnp.tanh(b_in + r * s[:, 2 * L:3 * L])
        h = n + z * (h - n)                    # (1-z)*n + z*h
        # fwd half valid for time i; bwd half valid for time T-1-i.
        scr[pl.ds(i, 1), 0:L] = h
        scr[pl.ds(T - 1 - i, 1), L:2 * L] = h

    hn_ref[...] = h                            # final hidden, both directions

    # Output projection: ONE batched matmul over all T steps; zero rows in
    # wo_ref select the valid direction lanes of each scratch half.  Output is
    # lane-dense (T, 128) so the HBM writeback is unmasked full-vreg stores.
    out_ref[...] = (
        jnp.dot(scr[...].astype(jnp.bfloat16), wo_ref[...],
                preferred_element_type=jnp.float32)
        + bias_ref[1:2, L:2 * L]
    )


# ---------------------------------------------------------------------------
# Wrapper (pallas_call plumbing; runtime work is just two tiny reshapes)
# ---------------------------------------------------------------------------
def decoder_forward(kparams, hidden_input, batch_size):
    H = kparams["h_size"]
    T = int(batch_size)        # module's `batch_size` becomes the GRU sequence length
    B = 2                      # zeros(2, batch_size, H) + batch_first => GRU batch is 2
    L = 2 * B * H              # fused lane width (= 4H = 128 for H=32)

    # [dir, batch, H] -> lanes [fwd b0 | fwd b1 | bwd b0 | bwd b1]
    h0 = jnp.reshape(hidden_input.astype(jnp.float32), (1, L))

    vmem = pl.BlockSpec(memory_space=pltpu.MemorySpace.VMEM)
    kernel = pl.pallas_call(
        functools.partial(_decoder_kernel, T, H),
        out_shape=(jax.ShapeDtypeStruct((T, L), jnp.float32),    # lane-dense projected output
                   jax.ShapeDtypeStruct((1, L), jnp.float32)),   # final hidden (fused lanes)
        in_specs=[vmem] * 4,
        out_specs=(vmem, vmem),
        scratch_shapes=[pltpu.VMEM((T, 2 * L), jnp.float32)],    # fwd-time | rev-time hiddens
    )

    out_pad, hn_flat = kernel(h0, kparams["w_gates"], kparams["biases"],
                              kparams["w_out"])

    output = jnp.transpose(out_pad[:, :B * H].reshape(T, B, H), (1, 0, 2))  # (2, T, H)
    h_n = hn_flat.reshape(2, B, H)                                          # (2, 2, H)
    return output, h_n


# ---------------------------------------------------------------------------
# One-time parameter preparation (kernel-friendly layout; x == 0 exploited
# here: W_ih weights dropped, their biases folded into the gate biases).
# MXU operands (weights) stored in bf16; biases stay f32.
# ---------------------------------------------------------------------------
def _block_diag(*blocks):
    n = sum(b.shape[0] for b in blocks)
    m = sum(b.shape[1] for b in blocks)
    out = jnp.zeros((n, m), jnp.float32)
    r = c = 0
    for b in blocks:
        out = out.at[r:r + b.shape[0], c:c + b.shape[1]].set(b)
        r += b.shape[0]
        c += b.shape[1]
    return out


def prepare_params(params):
    H = params["h_size"]
    L = 4 * H

    def gate_w(w, g):                 # (3H,H) -> transposed gate block (H,H)
        return jnp.asarray(w[g * H:(g + 1) * H, :].T, jnp.float32)

    def gate_b(b, g):
        return jnp.asarray(b[g * H:(g + 1) * H], jnp.float32)

    def tile4(bf, bb):                # per-direction biases -> (4H,) lane layout
        return jnp.concatenate([bf, bf, bb, bb])

    whh_f, whh_b = params["whh_f"], params["whh_b"]
    bih_f, bhh_f = params["bih_f"], params["bhh_f"]
    bih_b, bhh_b = params["bih_b"], params["bhh_b"]

    # Block-diagonal recurrent weights per gate ([fwd,fwd,bwd,bwd] blocks),
    # fused along lanes -> one (4H, 12H) RHS: [ W_r | W_z | W_n ].
    gate_blocks = []
    for g in range(3):                # gate order: r, z, n (PyTorch)
        wf = gate_w(whh_f, g)
        wb = gate_w(whh_b, g)
        gate_blocks.append(_block_diag(wf, wf, wb, wb))        # (4H, 4H)
    w_gates = jnp.concatenate(gate_blocks, axis=1)             # (4H, 12H)

    b_r = tile4(gate_b(bih_f, 0) + gate_b(bhh_f, 0),
                gate_b(bih_b, 0) + gate_b(bhh_b, 0))
    b_z = tile4(gate_b(bih_f, 1) + gate_b(bhh_f, 1),
                gate_b(bih_b, 1) + gate_b(bhh_b, 1))
    b_hn = tile4(gate_b(bhh_f, 2), gate_b(bhh_b, 2))
    b_in = tile4(gate_b(bih_f, 2), gate_b(bih_b, 2))

    # comboutput Linear(2H,H): out[t,b] = fwd_h[t,b] @ w_f + bwd_h[t,b] @ w_b + bout.
    # Stacked (8H, 4H) projection weight operating on the (T, 8H) scratch
    # [ fwd-time-ordered h | rev-time-ordered h ]; zero rows mask the lanes
    # whose direction is invalid in each half; output lanes 2H:4H are zero pad.
    wout = jnp.asarray(params["wout"], jnp.float32)            # (H, 2H)
    w_f = wout[:, :H].T                                        # (H, H)
    w_b = wout[:, H:].T                                        # (H, H)
    w_out = jnp.zeros((2 * L, L), jnp.float32)
    w_out = w_out.at[0:H, 0:H].set(w_f).at[H:2 * H, H:2 * H].set(w_f)
    w_out = w_out.at[L + 2 * H:L + 3 * H, 0:H].set(w_b)
    w_out = w_out.at[L + 3 * H:L + 4 * H, H:2 * H].set(w_b)

    b_out_pad = jnp.zeros((L,), jnp.float32).at[:2 * H].set(
        jnp.concatenate([params["bout"], params["bout"]]))

    # Bias block (2, 12H): row0 = [b_r | b_z | b_hn], row1 = [b_in | b_out_pad | 0].
    row0 = jnp.concatenate([b_r, b_z, b_hn])
    row1 = jnp.zeros((3 * L,), jnp.float32).at[0:L].set(b_in).at[L:2 * L].set(b_out_pad)
    biases = jnp.stack([row0, row1])                           # (2, 12H) f32

    return {
        "h_size": H,
        "w_gates": w_gates.astype(jnp.bfloat16),               # (128, 384) bf16
        "biases": biases,                                      # (2, 384)  f32
        "w_out": w_out.astype(jnp.bfloat16),                   # (256, 128) bf16
    }


# ---------------------------------------------------------------------------
# Deterministic parameter initialization (PyTorch-default uniform(-1/sqrt(H), 1/sqrt(H)))
# ---------------------------------------------------------------------------
def init_params(key, h_size):
    bound = 1.0 / math.sqrt(h_size)
    keys = jax.random.split(key, 10)

    def u(k, shape):
        return jax.random.uniform(k, shape, jnp.float32, -bound, bound)

    return {
        "h_size": h_size,
        # forward-direction GRU weights (gate order: r, z, n)
        "wih_f": u(keys[0], (3 * h_size, h_size)),   # unused by kernel (zero input)
        "whh_f": u(keys[1], (3 * h_size, h_size)),
        "bih_f": u(keys[2], (3 * h_size,)),
        "bhh_f": u(keys[3], (3 * h_size,)),
        # backward-direction GRU weights
        "wih_b": u(keys[4], (3 * h_size, h_size)),   # unused by kernel (zero input)
        "whh_b": u(keys[5], (3 * h_size, h_size)),
        "bih_b": u(keys[6], (3 * h_size,)),
        "bhh_b": u(keys[7], (3 * h_size,)),
        # comboutput Linear(2H, H)
        "wout": u(keys[8], (h_size, 2 * h_size)),
        "bout": u(keys[9], (h_size,)),
    }


# ---------------------------------------------------------------------------
# Pure-JAX reference (full f32 GRU with explicit zero input; correctness check)
# ---------------------------------------------------------------------------
def decoder_forward_ref(params, hidden_input, batch_size):
    H = params["h_size"]
    T = int(batch_size)
    B = 2
    x = jnp.zeros((B, T, H), jnp.float32)

    def cell(x_t, h, wih, whh, bih, bhh):
        gx = x_t @ wih.T + bih
        gh = h @ whh.T + bhh
        r = jax.nn.sigmoid(gx[:, :H] + gh[:, :H])
        z = jax.nn.sigmoid(gx[:, H:2 * H] + gh[:, H:2 * H])
        n = jnp.tanh(gx[:, 2 * H:] + r * gh[:, 2 * H:])
        return (1.0 - z) * n + z * h

    h_f = hidden_input[0]
    h_b = hidden_input[1]
    fwd = []
    bwd = [None] * T
    for t in range(T):
        h_f = cell(x[:, t], h_f, params["wih_f"], params["whh_f"],
                   params["bih_f"], params["bhh_f"])
        fwd.append(h_f)
    for t in range(T - 1, -1, -1):
        h_b = cell(x[:, t], h_b, params["wih_b"], params["whh_b"],
                   params["bih_b"], params["bhh_b"])
        bwd[t] = h_b
    gru_out = jnp.stack(
        [jnp.concatenate([fwd[t], bwd[t]], axis=-1) for t in range(T)], axis=1)  # (B, T, 2H)
    out = gru_out @ params["wout"].T + params["bout"]
    h_n = jnp.stack([h_f, h_b], axis=0)
    return out, h_n


# ---------------------------------------------------------------------------
if __name__ == "__main__":
    h_size = 32
    batch_size = 8   # becomes the GRU sequence length per the module's init_hidden
    # NOTE: batch_size (=T) is baked in at trace time via the static unroll;
    # a different batch_size retraces/recompiles.

    key = jax.random.PRNGKey(0)
    pkey, hkey = jax.random.split(key)
    params = init_params(pkey, h_size)
    kparams = prepare_params(params)   # one-time kernel-layout / bf16 conversion
    # hidden_input: (num_layers * num_directions = 2, GRU batch = 2, h_size)
    hidden_input = jax.random.normal(hkey, (2, 2, h_size), jnp.float32)

    out, h_n = decoder_forward(kparams, hidden_input, batch_size)
    jax.block_until_ready((out, h_n))

    out_r, hn_r = decoder_forward_ref(params, hidden_input, batch_size)
    assert out.shape == (2, batch_size, h_size), out.shape
    assert h_n.shape == (2, 2, h_size), h_n.shape
    # bf16 MXU operands (f32 accumulation / f32 carried state) -> ~1e-2-level
    # agreement with the pure-f32 reference over the 8-step recurrence.
    assert jnp.allclose(out, out_r, rtol=2e-2, atol=2e-2)
    assert jnp.allclose(h_n, hn_r, rtol=2e-2, atol=2e-2)

    print("KERNEL_OK")
</pallas_src>

<mosaic_0001>
module attributes {stable_mosaic.version = 11 : i64} {
  func.func @_decoder_kernel(%arg0: memref<1x128xf32, #tpu.memory_space<vmem>>, %arg1: memref<128x384xbf16, #tpu.memory_space<vmem>>, %arg2: memref<2x384xf32, #tpu.memory_space<vmem>>, %arg3: memref<256x128xbf16, #tpu.memory_space<vmem>>, %arg4: memref<8x128xf32, #tpu.memory_space<vmem>>, %arg5: memref<1x128xf32, #tpu.memory_space<vmem>>, %arg6: memref<8x256xf32, #tpu.memory_space<vmem>>) attributes {dimension_semantics = [], scalar_prefetch = 0 : i64, scratch_operands = 1 : i64, tpu.core_type = #tpu.core_type<tc>} {
    %c0 = arith.constant 0 : index
    %c0_0 = arith.constant 0 : index
    %0 = vector.load %arg2[%c0, %c0_0] : memref<2x384xf32, #tpu.memory_space<vmem>>, vector<1x384xf32>
    %c1 = arith.constant 1 : index
    %c0_1 = arith.constant 0 : index
    %1 = vector.load %arg2[%c1, %c0_1] : memref<2x384xf32, #tpu.memory_space<vmem>>, vector<1x128xf32>
    %c0_2 = arith.constant 0 : index
    %c0_3 = arith.constant 0 : index
    %2 = vector.load %arg0[%c0_2, %c0_3] : memref<1x128xf32, #tpu.memory_space<vmem>>, vector<1x128xf32>
    %3 = arith.truncf %2 : vector<1x128xf32> to vector<1x128xbf16>
    %c0_4 = arith.constant 0 : index
    %c0_5 = arith.constant 0 : index
    %4 = vector.load %arg1[%c0_4, %c0_5] : memref<128x384xbf16, #tpu.memory_space<vmem>>, vector<128x384xbf16>
    %cst = arith.constant dense<0.000000e+00> : vector<1x384xf32>
    %5 = tpu.matmul %3, %4, %cst {dimension_numbers = #tpu.dot_dimension_numbers<[1], [0], [0], [1], [0, 0, 1, 1], [], []>} : vector<1x128xbf16>, vector<128x384xbf16>, vector<1x384xf32> -> vector<1x384xf32>
    %6 = arith.addf %5, %0 : vector<1x384xf32>
    %7 = vector.extract_strided_slice %6 {offsets = [0, 0], sizes = [1, 128], strides = [1, 1]} : vector<1x384xf32> to vector<1x128xf32>
    %8 = arith.negf %7 : vector<1x128xf32>
    %9 = math.exp %8 : vector<1x128xf32>
    %cst_6 = arith.constant 1.000000e+00 : f32
    %10 = vector.broadcast %cst_6 : f32 to vector<1x128xf32>
    %11 = arith.addf %10, %9 : vector<1x128xf32>
    %12 = arith.divf %10, %11 : vector<1x128xf32>
    %13 = vector.extract_strided_slice %6 {offsets = [0, 128], sizes = [1, 128], strides = [1, 1]} : vector<1x384xf32> to vector<1x128xf32>
    %14 = arith.negf %13 : vector<1x128xf32>
    %15 = math.exp %14 : vector<1x128xf32>
    %cst_7 = arith.constant 1.000000e+00 : f32
    %16 = vector.broadcast %cst_7 : f32 to vector<1x128xf32>
    %17 = arith.addf %16, %15 : vector<1x128xf32>
    %18 = arith.divf %16, %17 : vector<1x128xf32>
    %19 = vector.extract_strided_slice %6 {offsets = [0, 256], sizes = [1, 128], strides = [1, 1]} : vector<1x384xf32> to vector<1x128xf32>
    %20 = arith.mulf %12, %19 : vector<1x128xf32>
    %21 = arith.addf %1, %20 : vector<1x128xf32>
    %22 = math.tanh %21 : vector<1x128xf32>
    %23 = arith.subf %2, %22 : vector<1x128xf32>
    %24 = arith.mulf %18, %23 : vector<1x128xf32>
    %25 = arith.addf %22, %24 : vector<1x128xf32>
    %c0_8 = arith.constant 0 : index
    %c0_9 = arith.constant 0 : index
    %26 = vector.load %arg6[%c0_8, %c0_9] : memref<8x256xf32, #tpu.memory_space<vmem>>, vector<1x128xf32>
    tpu.vector_store %arg6[%c0_8, %c0_9], %25 {strides = array<i32>} : memref<8x256xf32, #tpu.memory_space<vmem>>, vector<1x128xf32>,
    %c7 = arith.constant 7 : index
    %c128 = arith.constant 128 : index
    %27 = vector.load %arg6[%c7, %c128] : memref<8x256xf32, #tpu.memory_space<vmem>>, vector<1x128xf32>
    tpu.vector_store %arg6[%c7, %c128], %25 {strides = array<i32>} : memref<8x256xf32, #tpu.memory_space<vmem>>, vector<1x128xf32>,
    %28 = arith.truncf %25 : vector<1x128xf32> to vector<1x128xbf16>
    %c0_10 = arith.constant 0 : index
    %c0_11 = arith.constant 0 : index
    %29 = vector.load %arg1[%c0_10, %c0_11] : memref<128x384xbf16, #tpu.memory_space<vmem>>, vector<128x384xbf16>
    %cst_12 = arith.constant dense<0.000000e+00> : vector<1x384xf32>
    %30 = tpu.matmul %28, %29, %cst_12 {dimension_numbers = #tpu.dot_dimension_numbers<[1], [0], [0], [1], [0, 0, 1, 1], [], []>} : vector<1x128xbf16>, vector<128x384xbf16>, vector<1x384xf32> -> vector<1x384xf32>
    %31 = arith.addf %30, %0 : vector<1x384xf32>
    %32 = vector.extract_strided_slice %31 {offsets = [0, 0], sizes = [1, 128], strides = [1, 1]} : vector<1x384xf32> to vector<1x128xf32>
    %33 = arith.negf %32 : vector<1x128xf32>
    %34 = math.exp %33 : vector<1x128xf32>
    %cst_13 = arith.constant 1.000000e+00 : f32
    %35 = vector.broadcast %cst_13 : f32 to vector<1x128xf32>
    %36 = arith.addf %35, %34 : vector<1x128xf32>
    %37 = arith.divf %35, %36 : vector<1x128xf32>
    %38 = vector.extract_strided_slice %31 {offsets = [0, 128], sizes = [1, 128], strides = [1, 1]} : vector<1x384xf32> to vector<1x128xf32>
    %39 = arith.negf %38 : vector<1x128xf32>
    %40 = math.exp %39 : vector<1x128xf32>
    %cst_14 = arith.constant 1.000000e+00 : f32
    %41 = vector.broadcast %cst_14 : f32 to vector<1x128xf32>
    %42 = arith.addf %41, %40 : vector<1x128xf32>
    %43 = arith.divf %41, %42 : vector<1x128xf32>
    %44 = vector.extract_strided_slice %31 {offsets = [0, 256], sizes = [1, 128], strides = [1, 1]} : vector<1x384xf32> to vector<1x128xf32>
    %45 = arith.mulf %37, %44 : vector<1x128xf32>
    %46 = arith.addf %1, %45 : vector<1x128xf32>
    %47 = math.tanh %46 : vector<1x128xf32>
    %48 = arith.subf %25, %47 : vector<1x128xf32>
    %49 = arith.mulf %43, %48 : vector<1x128xf32>
    %50 = arith.addf %47, %49 : vector<1x128xf32>
    %c1_15 = arith.constant 1 : index
    %c0_16 = arith.constant 0 : index
    %51 = vector.load %arg6[%c1_15, %c0_16] : memref<8x256xf32, #tpu.memory_space<vmem>>, vector<1x128xf32>
    tpu.vector_store %arg6[%c1_15, %c0_16], %50 {strides = array<i32>} : memref<8x256xf32, #tpu.memory_space<vmem>>, vector<1x128xf32>,
    %c6 = arith.constant 6 : index
    %c128_17 = arith.constant 128 : index
    %52 = vector.load %arg6[%c6, %c128_17] : memref<8x256xf32, #tpu.memory_space<vmem>>, vector<1x128xf32>
    tpu.vector_store %arg6[%c6, %c128_17], %50 {strides = array<i32>} : memref<8x256xf32, #tpu.memory_space<vmem>>, vector<1x128xf32>,
    %53 = arith.truncf %50 : vector<1x128xf32> to vector<1x128xbf16>
    %c0_18 = arith.constant 0 : index
    %c0_19 = arith.constant 0 : index
    %54 = vector.load %arg1[%c0_18, %c0_19] : memref<128x384xbf16, #tpu.memory_space<vmem>>, vector<128x384xbf16>
    %cst_20 = arith.constant dense<0.000000e+00> : vector<1x384xf32>
    %55 = tpu.matmul %53, %54, %cst_20 {dimension_numbers = #tpu.dot_dimension_numbers<[1], [0], [0], [1], [0, 0, 1, 1], [], []>} : vector<1x128xbf16>, vector<128x384xbf16>, vector<1x384xf32> -> vector<1x384xf32>
    %56 = arith.addf %55, %0 : vector<1x384xf32>
    %57 = vector.extract_strided_slice %56 {offsets = [0, 0], sizes = [1, 128], strides = [1, 1]} : vector<1x384xf32> to vector<1x128xf32>
    %58 = arith.negf %57 : vector<1x128xf32>
    %59 = math.exp %58 : vector<1x128xf32>
    %cst_21 = arith.constant 1.000000e+00 : f32
    %60 = vector.broadcast %cst_21 : f32 to vector<1x128xf32>
    %61 = arith.addf %60, %59 : vector<1x128xf32>
    %62 = arith.divf %60, %61 : vector<1x128xf32>
    %63 = vector.extract_strided_slice %56 {offsets = [0, 128], sizes = [1, 128], strides = [1, 1]} : vector<1x384xf32> to vector<1x128xf32>
    %64 = arith.negf %63 : vector<1x128xf32>
    %65 = math.exp %64 : vector<1x128xf32>
    %cst_22 = arith.constant 1.000000e+00 : f32
    %66 = vector.broadcast %cst_22 : f32 to vector<1x128xf32>
    %67 = arith.addf %66, %65 : vector<1x128xf32>
    %68 = arith.divf %66, %67 : vector<1x128xf32>
    %69 = vector.extract_strided_slice %56 {offsets = [0, 256], sizes = [1, 128], strides = [1, 1]} : vector<1x384xf32> to vector<1x128xf32>
    %70 = arith.mulf %62, %69 : vector<1x128xf32>
    %71 = arith.addf %1, %70 : vector<1x128xf32>
    %72 = math.tanh %71 : vector<1x128xf32>
    %73 = arith.subf %50, %72 : vector<1x128xf32>
    %74 = arith.mulf %68, %73 : vector<1x128xf32>
    %75 = arith.addf %72, %74 : vector<1x128xf32>
    %c2 = arith.constant 2 : index
    %c0_23 = arith.constant 0 : index
    %76 = vector.load %arg6[%c2, %c0_23] : memref<8x256xf32, #tpu.memory_space<vmem>>, vector<1x128xf32>
    tpu.vector_store %arg6[%c2, %c0_23], %75 {strides = array<i32>} : memref<8x256xf32, #tpu.memory_space<vmem>>, vector<1x128xf32>,
    %c5 = arith.constant 5 : index
    %c128_24 = arith.constant 128 : index
    %77 = vector.load %arg6[%c5, %c128_24] : memref<8x256xf32, #tpu.memory_space<vmem>>, vector<1x128xf32>
    tpu.vector_store %arg6[%c5, %c128_24], %75 {strides = array<i32>} : memref<8x256xf32, #tpu.memory_space<vmem>>, vector<1x128xf32>,
    %78 = arith.truncf %75 : vector<1x128xf32> to vector<1x128xbf16>
    %c0_25 = arith.constant 0 : index
    %c0_26 = arith.constant 0 : index
    %79 = vector.load %arg1[%c0_25, %c0_26] : memref<128x384xbf16, #tpu.memory_space<vmem>>, vector<128x384xbf16>
    %cst_27 = arith.constant dense<0.000000e+00> : vector<1x384xf32>
    %80 = tpu.matmul %78, %79, %cst_27 {dimension_numbers = #tpu.dot_dimension_numbers<[1], [0], [0], [1], [0, 0, 1, 1], [], []>} : vector<1x128xbf16>, vector<128x384xbf16>, vector<1x384xf32> -> vector<1x384xf32>
    %81 = arith.addf %80, %0 : vector<1x384xf32>
    %82 = vector.extract_strided_slice %81 {offsets = [0, 0], sizes = [1, 128], strides = [1, 1]} : vector<1x384xf32> to vector<1x128xf32>
    %83 = arith.negf %82 : vector<1x128xf32>
    %84 = math.exp %83 : vector<1x128xf32>
    %cst_28 = arith.constant 1.000000e+00 : f32
    %85 = vector.broadcast %cst_28 : f32 to vector<1x128xf32>
    %86 = arith.addf %85, %84 : vector<1x128xf32>
    %87 = arith.divf %85, %86 : vector<1x128xf32>
    %88 = vector.extract_strided_slice %81 {offsets = [0, 128], sizes = [1, 128], strides = [1, 1]} : vector<1x384xf32> to vector<1x128xf32>
    %89 = arith.negf %88 : vector<1x128xf32>
    %90 = math.exp %89 : vector<1x128xf32>
    %cst_29 = arith.constant 1.000000e+00 : f32
    %91 = vector.broadcast %cst_29 : f32 to vector<1x128xf32>
    %92 = arith.addf %91, %90 : vector<1x128xf32>
    %93 = arith.divf %91, %92 : vector<1x128xf32>
    %94 = vector.extract_strided_slice %81 {offsets = [0, 256], sizes = [1, 128], strides = [1, 1]} : vector<1x384xf32> to vector<1x128xf32>
    %95 = arith.mulf %87, %94 : vector<1x128xf32>
    %96 = arith.addf %1, %95 : vector<1x128xf32>
    %97 = math.tanh %96 : vector<1x128xf32>
    %98 = arith.subf %75, %97 : vector<1x128xf32>
    %99 = arith.mulf %93, %98 : vector<1x128xf32>
    %100 = arith.addf %97, %99 : vector<1x128xf32>
    %c3 = arith.constant 3 : index
    %c0_30 = arith.constant 0 : index
    %101 = vector.load %arg6[%c3, %c0_30] : memref<8x256xf32, #tpu.memory_space<vmem>>, vector<1x128xf32>
    tpu.vector_store %arg6[%c3, %c0_30], %100 {strides = array<i32>} : memref<8x256xf32, #tpu.memory_space<vmem>>, vector<1x128xf32>,
    %c4 = arith.constant 4 : index
    %c128_31 = arith.constant 128 : index
    %102 = vector.load %arg6[%c4, %c128_31] : memref<8x256xf32, #tpu.memory_space<vmem>>, vector<1x128xf32>
    tpu.vector_store %arg6[%c4, %c128_31], %100 {strides = array<i32>} : memref<8x256xf32, #tpu.memory_space<vmem>>, vector<1x128xf32>,
    %103 = arith.truncf %100 : vector<1x128xf32> to vector<1x128xbf16>
    %c0_32 = arith.constant 0 : index
    %c0_33 = arith.constant 0 : index
    %104 = vector.load %arg1[%c0_32, %c0_33] : memref<128x384xbf16, #tpu.memory_space<vmem>>, vector<128x384xbf16>
    %cst_34 = arith.constant dense<0.000000e+00> : vector<1x384xf32>
    %105 = tpu.matmul %103, %104, %cst_34 {dimension_numbers = #tpu.dot_dimension_numbers<[1], [0], [0], [1], [0, 0, 1, 1], [], []>} : vector<1x128xbf16>, vector<128x384xbf16>, vector<1x384xf32> -> vector<1x384xf32>
    %106 = arith.addf %105, %0 : vector<1x384xf32>
    %107 = vector.extract_strided_slice %106 {offsets = [0, 0], sizes = [1, 128], strides = [1, 1]} : vector<1x384xf32> to vector<1x128xf32>
    %108 = arith.negf %107 : vector<1x128xf32>
    %109 = math.exp %108 : vector<1x128xf32>
    %cst_35 = arith.constant 1.000000e+00 : f32
    %110 = vector.broadcast %cst_35 : f32 to vector<1x128xf32>
    %111 = arith.addf %110, %109 : vector<1x128xf32>
    %112 = arith.divf %110, %111 : vector<1x128xf32>
    %113 = vector.extract_strided_slice %106 {offsets = [0, 128], sizes = [1, 128], strides = [1, 1]} : vector<1x384xf32> to vector<1x128xf32>
    %114 = arith.negf %113 : vector<1x128xf32>
    %115 = math.exp %114 : vector<1x128xf32>
    %cst_36 = arith.constant 1.000000e+00 : f32
    %116 = vector.broadcast %cst_36 : f32 to vector<1x128xf32>
    %117 = arith.addf %116, %115 : vector<1x128xf32>
    %118 = arith.divf %116, %117 : vector<1x128xf32>
    %119 = vector.extract_strided_slice %106 {offsets = [0, 256], sizes = [1, 128], strides = [1, 1]} : vector<1x384xf32> to vector<1x128xf32>
    %120 = arith.mulf %112, %119 : vector<1x128xf32>
    %121 = arith.addf %1, %120 : vector<1x128xf32>
    %122 = math.tanh %121 : vector<1x128xf32>
    %123 = arith.subf %100, %122 : vector<1x128xf32>
    %124 = arith.mulf %118, %123 : vector<1x128xf32>
    %125 = arith.addf %122, %124 : vector<1x128xf32>
    %c4_37 = arith.constant 4 : index
    %c0_38 = arith.constant 0 : index
    %126 = vector.load %arg6[%c4_37, %c0_38] : memref<8x256xf32, #tpu.memory_space<vmem>>, vector<1x128xf32>
    tpu.vector_store %arg6[%c4_37, %c0_38], %125 {strides = array<i32>} : memref<8x256xf32, #tpu.memory_space<vmem>>, vector<1x128xf32>,
    %c3_39 = arith.constant 3 : index
    %c128_40 = arith.constant 128 : index
    %127 = vector.load %arg6[%c3_39, %c128_40] : memref<8x256xf32, #tpu.memory_space<vmem>>, vector<1x128xf32>
    tpu.vector_store %arg6[%c3_39, %c128_40], %125 {strides = array<i32>} : memref<8x256xf32, #tpu.memory_space<vmem>>, vector<1x128xf32>,
    %128 = arith.truncf %125 : vector<1x128xf32> to vector<1x128xbf16>
    %c0_41 = arith.constant 0 : index
    %c0_42 = arith.constant 0 : index
    %129 = vector.load %arg1[%c0_41, %c0_42] : memref<128x384xbf16, #tpu.memory_space<vmem>>, vector<128x384xbf16>
    %cst_43 = arith.constant dense<0.000000e+00> : vector<1x384xf32>
    %130 = tpu.matmul %128, %129, %cst_43 {dimension_numbers = #tpu.dot_dimension_numbers<[1], [0], [0], [1], [0, 0, 1, 1], [], []>} : vector<1x128xbf16>, vector<128x384xbf16>, vector<1x384xf32> -> vector<1x384xf32>
    %131 = arith.addf %130, %0 : vector<1x384xf32>
    %132 = vector.extract_strided_slice %131 {offsets = [0, 0], sizes = [1, 128], strides = [1, 1]} : vector<1x384xf32> to vector<1x128xf32>
    %133 = arith.negf %132 : vector<1x128xf32>
    %134 = math.exp %133 : vector<1x128xf32>
    %cst_44 = arith.constant 1.000000e+00 : f32
    %135 = vector.broadcast %cst_44 : f32 to vector<1x128xf32>
    %136 = arith.addf %135, %134 : vector<1x128xf32>
    %137 = arith.divf %135, %136 : vector<1x128xf32>
    %138 = vector.extract_strided_slice %131 {offsets = [0, 128], sizes = [1, 128], strides = [1, 1]} : vector<1x384xf32> to vector<1x128xf32>
    %139 = arith.negf %138 : vector<1x128xf32>
    %140 = math.exp %139 : vector<1x128xf32>
    %cst_45 = arith.constant 1.000000e+00 : f32
    %141 = vector.broadcast %cst_45 : f32 to vector<1x128xf32>
    %142 = arith.addf %141, %140 : vector<1x128xf32>
    %143 = arith.divf %141, %142 : vector<1x128xf32>
    %144 = vector.extract_strided_slice %131 {offsets = [0, 256], sizes = [1, 128], strides = [1, 1]} : vector<1x384xf32> to vector<1x128xf32>
    %145 = arith.mulf %137, %144 : vector<1x128xf32>
    %146 = arith.addf %1, %145 : vector<1x128xf32>
    %147 = math.tanh %146 : vector<1x128xf32>
    %148 = arith.subf %125, %147 : vector<1x128xf32>
    %149 = arith.mulf %143, %148 : vector<1x128xf32>
    %150 = arith.addf %147, %149 : vector<1x128xf32>
    %c5_46 = arith.constant 5 : index
    %c0_47 = arith.constant 0 : index
    %151 = vector.load %arg6[%c5_46, %c0_47] : memref<8x256xf32, #tpu.memory_space<vmem>>, vector<1x128xf32>
    tpu.vector_store %arg6[%c5_46, %c0_47], %150 {strides = array<i32>} : memref<8x256xf32, #tpu.memory_space<vmem>>, vector<1x128xf32>,
    %c2_48 = arith.constant 2 : index
    %c128_49 = arith.constant 128 : index
    %152 = vector.load %arg6[%c2_48, %c128_49] : memref<8x256xf32, #tpu.memory_space<vmem>>, vector<1x128xf32>
    tpu.vector_store %arg6[%c2_48, %c128_49], %150 {strides = array<i32>} : memref<8x256xf32, #tpu.memory_space<vmem>>, vector<1x128xf32>,
    %153 = arith.truncf %150 : vector<1x128xf32> to vector<1x128xbf16>
    %c0_50 = arith.constant 0 : index
    %c0_51 = arith.constant 0 : index
    %154 = vector.load %arg1[%c0_50, %c0_51] : memref<128x384xbf16, #tpu.memory_space<vmem>>, vector<128x384xbf16>
    %cst_52 = arith.constant dense<0.000000e+00> : vector<1x384xf32>
    %155 = tpu.matmul %153, %154, %cst_52 {dimension_numbers = #tpu.dot_dimension_numbers<[1], [0], [0], [1], [0, 0, 1, 1], [], []>} : vector<1x128xbf16>, vector<128x384xbf16>, vector<1x384xf32> -> vector<1x384xf32>
    %156 = arith.addf %155, %0 : vector<1x384xf32>
    %157 = vector.extract_strided_slice %156 {offsets = [0, 0], sizes = [1, 128], strides = [1, 1]} : vector<1x384xf32> to vector<1x128xf32>
    %158 = arith.negf %157 : vector<1x128xf32>
    %159 = math.exp %158 : vector<1x128xf32>
    %cst_53 = arith.constant 1.000000e+00 : f32
    %160 = vector.broadcast %cst_53 : f32 to vector<1x128xf32>
    %161 = arith.addf %160, %159 : vector<1x128xf32>
    %162 = arith.divf %160, %161 : vector<1x128xf32>
    %163 = vector.extract_strided_slice %156 {offsets = [0, 128], sizes = [1, 128], strides = [1, 1]} : vector<1x384xf32> to vector<1x128xf32>
    %164 = arith.negf %163 : vector<1x128xf32>
    %165 = math.exp %164 : vector<1x128xf32>
    %cst_54 = arith.constant 1.000000e+00 : f32
    %166 = vector.broadcast %cst_54 : f32 to vector<1x128xf32>
    %167 = arith.addf %166, %165 : vector<1x128xf32>
    %168 = arith.divf %166, %167 : vector<1x128xf32>
    %169 = vector.extract_strided_slice %156 {offsets = [0, 256], sizes = [1, 128], strides = [1, 1]} : vector<1x384xf32> to vector<1x128xf32>
    %170 = arith.mulf %162, %169 : vector<1x128xf32>
    %171 = arith.addf %1, %170 : vector<1x128xf32>
    %172 = math.tanh %171 : vector<1x128xf32>
    %173 = arith.subf %150, %172 : vector<1x128xf32>
    %174 = arith.mulf %168, %173 : vector<1x128xf32>
    %175 = arith.addf %172, %174 : vector<1x128xf32>
    %c6_55 = arith.constant 6 : index
    %c0_56 = arith.constant 0 : index
    %176 = vector.load %arg6[%c6_55, %c0_56] : memref<8x256xf32, #tpu.memory_space<vmem>>, vector<1x128xf32>
    tpu.vector_store %arg6[%c6_55, %c0_56], %175 {strides = array<i32>} : memref<8x256xf32, #tpu.memory_space<vmem>>, vector<1x128xf32>,
    %c1_57 = arith.constant 1 : index
    %c128_58 = arith.constant 128 : index
    %177 = vector.load %arg6[%c1_57, %c128_58] : memref<8x256xf32, #tpu.memory_space<vmem>>, vector<1x128xf32>
    tpu.vector_store %arg6[%c1_57, %c128_58], %175 {strides = array<i32>} : memref<8x256xf32, #tpu.memory_space<vmem>>, vector<1x128xf32>,
    %178 = arith.truncf %175 : vector<1x128xf32> to vector<1x128xbf16>
    %c0_59 = arith.constant 0 : index
    %c0_60 = arith.constant 0 : index
    %179 = vector.load %arg1[%c0_59, %c0_60] : memref<128x384xbf16, #tpu.memory_space<vmem>>, vector<128x384xbf16>
    %cst_61 = arith.constant dense<0.000000e+00> : vector<1x384xf32>
    %180 = tpu.matmul %178, %179, %cst_61 {dimension_numbers = #tpu.dot_dimension_numbers<[1], [0], [0], [1], [0, 0, 1, 1], [], []>} : vector<1x128xbf16>, vector<128x384xbf16>, vector<1x384xf32> -> vector<1x384xf32>
    %181 = arith.addf %180, %0 : vector<1x384xf32>
    %182 = vector.extract_strided_slice %181 {offsets = [0, 0], sizes = [1, 128], strides = [1, 1]} : vector<1x384xf32> to vector<1x128xf32>
    %183 = arith.negf %182 : vector<1x128xf32>
    %184 = math.exp %183 : vector<1x128xf32>
    %cst_62 = arith.constant 1.000000e+00 : f32
    %185 = vector.broadcast %cst_62 : f32 to vector<1x128xf32>
    %186 = arith.addf %185, %184 : vector<1x128xf32>
    %187 = arith.divf %185, %186 : vector<1x128xf32>
    %188 = vector.extract_strided_slice %181 {offsets = [0, 128], sizes = [1, 128], strides = [1, 1]} : vector<1x384xf32> to vector<1x128xf32>
    %189 = arith.negf %188 : vector<1x128xf32>
    %190 = math.exp %189 : vector<1x128xf32>
    %cst_63 = arith.constant 1.000000e+00 : f32
    %191 = vector.broadcast %cst_63 : f32 to vector<1x128xf32>
    %192 = arith.addf %191, %190 : vector<1x128xf32>
    %193 = arith.divf %191, %192 : vector<1x128xf32>
    %194 = vector.extract_strided_slice %181 {offsets = [0, 256], sizes = [1, 128], strides = [1, 1]} : vector<1x384xf32> to vector<1x128xf32>
    %195 = arith.mulf %187, %194 : vector<1x128xf32>
    %196 = arith.addf %1, %195 : vector<1x128xf32>
    %197 = math.tanh %196 : vector<1x128xf32>
    %198 = arith.subf %175, %197 : vector<1x128xf32>
    %199 = arith.mulf %193, %198 : vector<1x128xf32>
    %200 = arith.addf %197, %199 : vector<1x128xf32>
    %c7_64 = arith.constant 7 : index
    %c0_65 = arith.constant 0 : index
    %201 = vector.load %arg6[%c7_64, %c0_65] : memref<8x256xf32, #tpu.memory_space<vmem>>, vector<1x128xf32>
    tpu.vector_store %arg6[%c7_64, %c0_65], %200 {strides = array<i32>} : memref<8x256xf32, #tpu.memory_space<vmem>>, vector<1x128xf32>,
    %c0_66 = arith.constant 0 : index
    %c128_67 = arith.constant 128 : index
    %202 = vector.load %arg6[%c0_66, %c128_67] : memref<8x256xf32, #tpu.memory_space<vmem>>, vector<1x128xf32>
    tpu.vector_store %arg6[%c0_66, %c128_67], %200 {strides = array<i32>} : memref<8x256xf32, #tpu.memory_space<vmem>>, vector<1x128xf32>,
    %c0_68 = arith.constant 0 : index
    %c0_69 = arith.constant 0 : index
    %203 = vector.load %arg5[%c0_68, %c0_69] : memref<1x128xf32, #tpu.memory_space<vmem>>, vector<1x128xf32>
    tpu.vector_store %arg5[%c0_68, %c0_69], %200 {strides = array<i32>} : memref<1x128xf32, #tpu.memory_space<vmem>>, vector<1x128xf32>,
    %c0_70 = arith.constant 0 : index
    %c0_71 = arith.constant 0 : index
    %204 = vector.load %arg6[%c0_70, %c0_71] : memref<8x256xf32, #tpu.memory_space<vmem>>, vector<8x256xf32>
    %205 = arith.truncf %204 : vector<8x256xf32> to vector<8x256xbf16>
    %c0_72 = arith.constant 0 : index
    %c0_73 = arith.constant 0 : index
    %206 = vector.load %arg3[%c0_72, %c0_73] : memref<256x128xbf16, #tpu.memory_space<vmem>>, vector<256x128xbf16>
    %cst_74 = arith.constant dense<0.000000e+00> : vector<8x128xf32>
    %207 = tpu.matmul %205, %206, %cst_74 {dimension_numbers = #tpu.dot_dimension_numbers<[1], [0], [0], [1], [0, 0, 1, 1], [], []>} : vector<8x256xbf16>, vector<256x128xbf16>, vector<8x128xf32> -> vector<8x128xf32>
    %c1_75 = arith.constant 1 : index
    %c128_76 = arith.constant 128 : index
    %208 = vector.load %arg2[%c1_75, %c128_76] : memref<2x384xf32, #tpu.memory_space<vmem>>, vector<1x128xf32>
    %209 = vector.broadcast %208 : vector<1x128xf32> to vector<8x128xf32>
    %210 = arith.addf %207, %209 : vector<8x128xf32>
    %c0_77 = arith.constant 0 : index
    %c0_78 = arith.constant 0 : index
    %211 = vector.load %arg4[%c0_77, %c0_78] : memref<8x128xf32, #tpu.memory_space<vmem>>, vector<8x128xf32>
    tpu.vector_store %arg4[%c0_77, %c0_78], %210 {strides = array<i32>} : memref<8x128xf32, #tpu.memory_space<vmem>>, vector<8x128xf32>,
    return
  }
}

</mosaic_0001>

<bundles_post_ra>
// kernel: tpu_custom_call.1
= control target key start
LH: loop header
LB: loop body
LE: loop exit
PB: predicated region body
PF: predicated region fallthrough
CT: control target
= control target key end

     0   :  { %11 = vsyncpa [#allocation4], 0  ;;  %s3690_s0 = inlined_call_operand.hbm [shape: f32[1,128], index: 0, kind: input, shape index: {}]   ;;  %s3691_s1 = inlined_call_operand.hbm [shape: bf16[128,384], index: 1, kind: input, shape index: {}]   ;;  %s3692_s2 = inlined_call_operand.vmem [shape: f32[2,384], index: 2, kind: input, shape index: {}]   ;;  %s3693_s3 = inlined_call_operand.hbm [shape: bf16[256,128], index: 3, kind: input, shape index: {}]   ;;  %s3694_s4 = inlined_call_operand.hbm [shape: f32[8,128], index: 4, kind: output, shape index: {0}]   ;;  %s3695_s5 = inlined_call_operand.hbm [shape: f32[1,128], index: 5, kind: output, shape index: {1}]  }
   0x1   :  { %12 = vsyncpa [#allocation7], 0 }
   0x2   :  { %13 = vsyncpa [#allocation5], 0 }
   0x3   :  { %14 = vsyncpa [#allocation11], 0  ;;  %s3203_s18 = smov [#allocation6]   ;;  %s3085_s22 = scalar_lea.hbm %s3691_s1, 3072 }
   0x4   :  { %s30_s19 = sshll.u32 %s3203_s18, 4  ;;  %p3086_p0 = scmp.ne.s32.totalorder %s3691_s1, %s3085_s22  ;;  %s31_s19 = int_to_ptr.vmem [resolvable:$true] %s30_s19 }
   0x5   :  { %p3089_p1 = scmp.lt.u32.totalorder %s3085_s22, %s3691_s1 }
   0x7   :  { %p3091_p2 = pnand %p3089_p1, %p3086_p0 }
   0x9   :  { %3094 = shalt.err (!%p3091_p2)
}
   0xa   :  { %s3095_s27 = scalar_lea.vmem %s31_s19, 3072  ;;  %p3100_p4 = scmp.lt.s32.totalorder %s31_s19, %s31_s19 }
   0xb   :  { %p3096_p3 = scmp.ne.s32.totalorder %s31_s19, %s3095_s27  ;;  %p3101_p5 = scmp.lt.s32.totalorder %s3095_s27, %s3095_s27 }
   0xd   :  { %p3102_p6 = por %p3101_p5, %p3100_p4 }
   0xf   :  { %p3103_p7 = pnand %p3102_p6, %p3096_p3 }
  0x11   :  { %3106 = shalt.err (!%p3103_p7)
}
  0x12   :  { %s3204_s28 = smov 192   ;;  %s3205_s29 = smov 12  }
  0x13   :  { %36 = dma.hbm_to_vmem [thread:$0]  %s3691_s1, 3072, %s31_s19, [#allocation7], %s3204_s28, %s3204_s28, %s3205_s29  }
  0x14   :  { %s3206_s7 = smov [#allocation3]   ;;  %s3207_s9 = smov [#allocation8]  }
  0x15   :  { %s21_s8 = sshll.u32 %s3206_s7, 4  ;;  %s44_s10 = sshll.u32 %s3207_s9, 4  ;;  %s22_s8 = int_to_ptr.vmem [resolvable:$true] %s21_s8  ;;  %s45_s10 = int_to_ptr.vmem [resolvable:$true] %s44_s10 }
  0x16   :  { %s3107_s13 = scalar_lea.hbm %s3690_s0, 16 }
  0x17   :  { %p3108_p8 = scmp.ne.s32.totalorder %s3690_s0, %s3107_s13  ;;  %p3111_p9 = scmp.lt.u32.totalorder %s3107_s13, %s3690_s0 }
  0x19   :  { %p3113_p10 = pnand %p3111_p9, %p3108_p8 }
  0x1b   :  { %3116 = shalt.err (!%p3113_p10)
}
  0x1c   :  { %s3117_s1 = scalar_lea.vmem %s22_s8, 16  ;;  %s3121_s18 = scalar_lea.vmem %s22_s8, 32 }
  0x1d   :  { %p3118_p11 = scmp.ne.s32.totalorder %s22_s8, %s3117_s1  ;;  %p3122_p12 = scmp.lt.s32.totalorder %s22_s8, %s22_s8 }
  0x1e   :  { %p3123_p13 = scmp.lt.s32.totalorder %s3121_s18, %s3117_s1 }
  0x20   :  { %p3124_p0 = por %p3123_p13, %p3122_p12 }
  0x22   :  { %p3125_p1 = pnand %p3124_p0, %p3118_p11 }
  0x24   :  { %3128 = shalt.err (!%p3125_p1)
}
  0x25   :  { %24 = dma.hbm_to_vmem [thread:$0]  %s3690_s0, 16, %s22_s8, [#allocation4]  }
  0x26   :  { %s3129_s23 = scalar_lea.hbm %s3693_s3, 2048 }
  0x27   :  { %p3130_p2 = scmp.ne.s32.totalorder %s3693_s3, %s3129_s23  ;;  %p3133_p3 = scmp.lt.u32.totalorder %s3129_s23, %s3693_s3 }
  0x29   :  { %p3135_p4 = pnand %p3133_p3, %p3130_p2 }
  0x2b   :  { %3138 = shalt.err (!%p3135_p4)
}
  0x2c   :  { %s3139_s28 = scalar_lea.vmem %s45_s10, 2048  ;;  %p3144_p6 = scmp.lt.s32.totalorder %s45_s10, %s45_s10 }
  0x2d   :  { %p3140_p5 = scmp.ne.s32.totalorder %s45_s10, %s3139_s28  ;;  %p3145_p7 = scmp.lt.s32.totalorder %s3139_s28, %s3139_s28 }
  0x2f   :  { %p3146_p8 = por %p3145_p7, %p3144_p6 }
  0x31   :  { %p3147_p9 = pnand %p3146_p8, %p3140_p5 }
  0x33   :  { %3150 = shalt.err (!%p3147_p9)
}
  0x34   :  { %s3208_s0 = smov 64   ;;  %s3209_s29 = smov 4  }
  0x35   :  { %50 = dma.hbm_to_vmem [thread:$0]  %s3693_s3, 2048, %s45_s10, [#allocation7], %s3208_s0, %s3208_s0, %s3209_s29  }
  0x36   :  { %3195 = dma.done.wait [#allocation4], 16  }
  0x37   :  { %3196 = vsyncadd [#allocation4], 4294967280 }
  0x38   :  { %3197 = dma.done.wait [#allocation7], 5120  }
  0x39   :  { %3198 = vsyncadd [#allocation7], 4294962176  ;;  %v3210_v0 = vmov 0.0   ;;  %v3211_v1 = vmov 0   ;;  %vm3212_vm0 = vmmov 0   ;;  %v226_v36 = vlaneseq  ;;  %s3213_s12 = smov [#allocation10]  }
  0x3a   :  { %2704 = vmatprep.subr.bf16.mxu1 %v3210_v0  ;;  %273 = vmatprep.mubr.bf16.mxu0 %v3211_v1  ;;  %v3285_v2 = vld [vmem:[#allocation6 + $0x4] ss:$12 sps:$4 sm:$0xff]   ;;  %v3287_v3 = vld [vmem:[#allocation6] ss:$12 sps:$4 sm:$0xff]   ;;  %v3290_v4 = vld [vmem:[#allocation6 + $0x1c] ss:$12 sps:$4 sm:$0xff]  }
  0x3b   :  { %2720 = vmatprep.mubr.msk.bf16.mxu1 %vm3212_vm0, %v3210_v0  ;;  %241 = vmatprep.subr.bf16.mxu0 %v3285_v2  ;;  %v3293_v5 = vld [vmem:[#allocation6 + $0x18] ss:$12 sps:$4 sm:$0xff]   ;;  %v3296_v6 = vld [vmem:[#allocation6 + $0x34] ss:$12 sps:$4 sm:$0xff]   ;;  %v3299_v7 = vld [vmem:[#allocation6 + $0x30] ss:$12 sps:$4 sm:$0xff]  }
  0x3c   :  { %242 = vmatpush1.bf16.msra.mxu0 %v3287_v3  ;;  %v3302_v8 = vld [vmem:[#allocation6 + $0x4c] ss:$12 sps:$4 sm:$0xff]   ;;  %v2896_v9 = vld [vmem:[#allocation6 + $0x8] ss:$12 sps:$4 sm:$0xff]   ;;  %v3308_v11 = vld [vmem:[#allocation6 + $0x64] ss:$12 sps:$4 sm:$0xff]  }
  0x3d   :  { %243 = vmatprep.subr.bf16.mxu0 %v3290_v4  ;;  %v3305_v10 = vld [vmem:[#allocation6 + $0x48] ss:$12 sps:$4 sm:$0xff]   ;;  %2705 = vmatpush3.bf16.msra.mxu1 %v2896_v9  ;;  %v2900_v12 = vld [vmem:[#allocation6 + $0x20] ss:$12 sps:$4 sm:$0xff]   ;;  %v2902_v14 = vld [vmem:[#allocation6 + $0x38] ss:$12 sps:$4 sm:$0xff]  }
  0x3e   :  { %2706 = vmatprep.subr.bf16.mxu1 %v3210_v0  ;;  %v3311_v13 = vld [vmem:[#allocation6 + $0x60] ss:$12 sps:$4 sm:$0xff]   ;;  %v3315_v15 = vld [vmem:[#allocation6 + $0x7c] ss:$12 sps:$4 sm:$0xff]   ;;  %v3318_v16 = vld [vmem:[#allocation6 + $0x78] ss:$12 sps:$4 sm:$0xff]  }
  0x3f   :  { %v3320_v17 = vld [vmem:[#allocation6 + $0x94] ss:$12 sps:$4 sm:$0xff]   ;;  %v2903_v18 = vld [vmem:[#allocation6 + $0x50] ss:$12 sps:$4 sm:$0xff]   ;;  %v3327_v21 = vld [vmem:[#allocation6 + $0xac] ss:$12 sps:$4 sm:$0xff]  }
  0x40   :  { %244 = vmatpush1.bf16.msra.mxu0 %v3293_v5  ;;  %v3325_v19 = vld [vmem:[#allocation6 + $0x90] ss:$12 sps:$4 sm:$0xff]   ;;  %v2904_v20 = vld [vmem:[#allocation6 + $0x68] ss:$12 sps:$4 sm:$0xff]   ;;  %v2905_v24 = vld [vmem:[#allocation6 + $0x80] ss:$12 sps:$4 sm:$0xff]  }
  0x41   :  { %245 = vmatprep.subr.bf16.mxu0 %v3296_v6  ;;  %2707 = vmatpush3.bf16.msra.mxu1 %v2900_v12  ;;  %v3332_v22 = vld [vmem:[#allocation6 + $0xa8] ss:$12 sps:$4 sm:$0xff]   ;;  %v3334_v23 = vld [vmem:[#allocation3] sm:$0x1]  ;;  %v2906_v25 = vld [vmem:[#allocation6 + $0x98] ss:$12 sps:$4 sm:$0xff]  }
  0x42   :  { %2708 = vmatprep.subr.bf16.mxu1 %v3210_v0  ;;  %v64_v26 = vpack.c.bf16 %v3334_v23, %v3334_v23  ;;  %v2907_v27 = vld [vmem:[#allocation6 + $0xb0] ss:$12 sps:$4 sm:$0xff]   ;;  %v2908_v28 = vld [vmem:[#allocation6 + $0x8] ss:$12 sps:$4 sm:$0xff]   ;;  %v2909_v29 = vld [vmem:[#allocation6 + $0x20] ss:$12 sps:$4 sm:$0xff]  }
  0x43   :  { %v2910_v30 = vld [vmem:[#allocation6 + $0x38] ss:$12 sps:$4 sm:$0xff]   ;;  %v2911_v31 = vld [vmem:[#allocation6 + $0x50] ss:$12 sps:$4 sm:$0xff]   ;;  %v2912_v32 = vld [vmem:[#allocation6 + $0x68] ss:$12 sps:$4 sm:$0xff]  }
  0x44   :  { %246 = vmatpush1.bf16.msra.mxu0 %v3299_v7  ;;  %v2913_v33 = vld [vmem:[#allocation6 + $0x80] ss:$12 sps:$4 sm:$0xff]   ;;  %v2914_v34 = vld [vmem:[#allocation6 + $0x98] ss:$12 sps:$4 sm:$0xff]   ;;  %v2915_v35 = vld [vmem:[#allocation6 + $0xb0] ss:$12 sps:$4 sm:$0xff]  }
  0x45   :  { %247 = vmatprep.subr.bf16.mxu0 %v3302_v8  ;;  %2709 = vmatpush3.bf16.msra.mxu1 %v2902_v14  ;;  %v227_v37 = vshrl.u32 %v226_v36, 7  ;;  %v61_v39 = vld [vmem:[%s3692_s2] ss:$2 sm:$0x7]  ;;  %v3388_v62 = vld [vmem:[%s3692_s2 + $0x1] sm:$0x1] }
  0x46   :  { %2710 = vmatprep.subr.bf16.mxu1 %v3210_v0  ;;  %s2371_s13 = sshll.u32 %s3213_s12, 4  ;;  %s2372_s13 = int_to_ptr.vmem [resolvable:$true] %s2371_s13 }
  0x47   :  { %v228_v38 = vsub.s32 0, %v227_v37  ;;  %v232_v43 = vsub.s32 1, %v227_v37  ;;  %v236_v57 = vsub.s32 2, %v227_v37  ;;  %s3151_s14 = scalar_lea.vmem %s2372_s13, 16  ;;  %s3155_s15 = scalar_lea.vmem %s2372_s13, 32 }
  0x48   :  { %248 = vmatpush1.bf16.msra.mxu0 %v3305_v10  ;;  %p3152_p10 = scmp.ne.s32.totalorder %s2372_s13, %s3151_s14  ;;  %p3156_p11 = scmp.lt.s32.totalorder %s2372_s13, %s2372_s13 }
  0x49   :  { %249 = vmatprep.subr.bf16.mxu0 %v3308_v11  ;;  %2711 = vmatpush3.bf16.msra.mxu1 %v2903_v18  ;;  %v3376_v40 = vrot.slane %v61_v39, %v228_v38  ;;  %v3379_v48 = vrot.slane %v61_v39, %v232_v43  ;;  %v3382_v58 = vrot.slane %v61_v39, %v236_v57  ;;  %p3157_p12 = scmp.lt.s32.totalorder %s3155_s15, %s3151_s14 }
  0x4a   :  { %2712 = vmatprep.subr.bf16.mxu1 %v3210_v0 }
  0x4b   :  { %p3158_p13 = por %p3157_p12, %p3156_p11 }
  0x4c   :  { %250 = vmatpush1.bf16.msra.mxu0 %v3311_v13 }
  0x4d   :  { %251 = vmatprep.subr.bf16.mxu0 %v3315_v15  ;;  %2713 = vmatpush3.bf16.msra.mxu1 %v2904_v20  ;;  %p3159_p0 = pnand %p3158_p13, %p3152_p10 }
  0x4e   :  { %2714 = vmatprep.subr.bf16.mxu1 %v3210_v0 }
  0x50   :  { %252 = vmatpush1.bf16.msra.mxu0 %v3318_v16 }
  0x51   :  { %253 = vmatprep.subr.bf16.mxu0 %v3320_v17  ;;  %2715 = vmatpush3.bf16.msra.mxu1 %v2905_v24 }
  0x52   :  { %2716 = vmatprep.subr.bf16.mxu1 %v3210_v0 }
  0x54   :  { %254 = vmatpush1.bf16.msra.mxu0 %v3325_v19 }
  0x55   :  { %255 = vmatprep.subr.bf16.mxu0 %v3327_v21  ;;  %2717 = vmatpush3.bf16.msra.mxu1 %v2906_v25 }
  0x56   :  { %2718 = vmatprep.subr.bf16.mxu1 %v3210_v0 }
  0x58   :  { %256 = vmatpush1.bf16.msra.mxu0 %v3332_v22 }
  0x59   :  { %503 = vmatprep.subr.bf16.mxu0 %v3285_v2  ;;  %2719 = vmatpush3.bf16.msra.mxu1 %v2907_v27  ;;  %v2917_v27 = vld [vmem:[#allocation6 + $0x20] ss:$12 sps:$4 sm:$0xff]  }
  0x5a   :  { %2724 = vmatprep.subr.bf16.mxu1 %v3210_v0 }
  0x5b   :  { %274 = vmatmul.mubr.bf16.vlgmr.msra.gmra.mrb[0].mxu0 %v64_v26 }
  0x5c   :  { %504 = vmatpush1.bf16.msra.mxu0 %v3287_v3  ;;  %535 = vmatprep.mubr.bf16.mxu0 %v3211_v1 }
  0x5d   :  { %505 = vmatprep.subr.bf16.mxu0 %v3290_v4  ;;  %2721 = vmatmul.mubr.bf16.vlgmr.msra.gmra.mrb[0].mxu1 %v64_v26 }
  0x5e   :  { %2740 = vmatprep.mubr.msk.bf16.mxu1 %vm3212_vm0, %v3210_v0  ;;  %2725 = vmatpush3.bf16.msra.mxu1 %v2908_v28  ;;  %v2918_v28 = vld [vmem:[#allocation6 + $0x38] ss:$12 sps:$4 sm:$0xff]  }
  0x5f   :  { %2726 = vmatprep.subr.bf16.mxu1 %v3210_v0 }
  0x60   :  { %506 = vmatpush1.bf16.msra.mxu0 %v3293_v5 }
  0x61   :  { %507 = vmatprep.subr.bf16.mxu0 %v3296_v6 }
  0x62   :  { %2727 = vmatpush3.bf16.msra.mxu1 %v2909_v29  ;;  %v2919_v29 = vld [vmem:[#allocation6 + $0x50] ss:$12 sps:$4 sm:$0xff]  }
  0x63   :  { %2728 = vmatprep.subr.bf16.mxu1 %v3210_v0 }
  0x64   :  { %508 = vmatpush1.bf16.msra.mxu0 %v3299_v7 }
  0x65   :  { %509 = vmatprep.subr.bf16.mxu0 %v3302_v8 }
  0x66   :  { %2729 = vmatpush3.bf16.msra.mxu1 %v2910_v30  ;;  %v2920_v30 = vld [vmem:[#allocation6 + $0x68] ss:$12 sps:$4 sm:$0xff]  }
  0x67   :  { %2730 = vmatprep.subr.bf16.mxu1 %v3210_v0 }
  0x68   :  { %510 = vmatpush1.bf16.msra.mxu0 %v3305_v10 }
  0x69   :  { %511 = vmatprep.subr.bf16.mxu0 %v3308_v11 }
  0x6a   :  { %2731 = vmatpush3.bf16.msra.mxu1 %v2911_v31  ;;  %v2921_v31 = vld [vmem:[#allocation6 + $0x80] ss:$12 sps:$4 sm:$0xff]  }
  0x6b   :  { %2732 = vmatprep.subr.bf16.mxu1 %v3210_v0 }
  0x6c   :  { %512 = vmatpush1.bf16.msra.mxu0 %v3311_v13 }
  0x6d   :  { %513 = vmatprep.subr.bf16.mxu0 %v3315_v15 }
  0x6e   :  { %2733 = vmatpush3.bf16.msra.mxu1 %v2912_v32  ;;  %v2922_v32 = vld [vmem:[#allocation6 + $0x98] ss:$12 sps:$4 sm:$0xff]  }
  0x6f   :  { %2734 = vmatprep.subr.bf16.mxu1 %v3210_v0 }
  0x70   :  { %514 = vmatpush1.bf16.msra.mxu0 %v3318_v16 }
  0x71   :  { %515 = vmatprep.subr.bf16.mxu0 %v3320_v17 }
  0x72   :  { %2735 = vmatpush3.bf16.msra.mxu1 %v2913_v33  ;;  %v2923_v33 = vld [vmem:[#allocation6 + $0xb0] ss:$12 sps:$4 sm:$0xff]  }
  0x73   :  { %2736 = vmatprep.subr.bf16.mxu1 %v3210_v0 }
  0x74   :  { %516 = vmatpush1.bf16.msra.mxu0 %v3325_v19 }
  0x75   :  { %517 = vmatprep.subr.bf16.mxu0 %v3327_v21 }
  0x76   :  { %2737 = vmatpush3.bf16.msra.mxu1 %v2914_v34 }
  0x77   :  { %2738 = vmatprep.subr.bf16.mxu1 %v3210_v0 }
  0x78   :  { %518 = vmatpush1.bf16.msra.mxu0 %v3332_v22 }
  0x79   :  { %765 = vmatprep.subr.bf16.mxu0 %v3285_v2 }
  0x7a   :  { %2739 = vmatpush3.bf16.msra.mxu1 %v2915_v35 }
  0x7b   :  { %2744 = vmatprep.subr.bf16.mxu1 %v3210_v0 }
 0x12e   :  { %v275_v41 = vpop.f32.mrb[0].mxu0 }
 0x12f   :  { %v276_v42 = vadd.f32 %v275_v41, %v3376_v40  ;;  %v277_v44 = vpop.f32.mrb[1].mxu0 }
 0x130   :  { %v279_v45 = vpop.f32.mrb[2].mxu0  ;;  %v316_v49 = vpop.f32.mrb[0].mxu1  ;;  %v278_v50 = vadd.f32 %v277_v44, %v3379_v48 }
 0x131   :  { %v2409_v46 = vmul.f32 -1.442695, %v276_v42  ;;  %v280_v47 = vpop.f32.mrb[3].mxu0  ;;  %v2722_v51 = vpop.f32.mrb[1].mxu1  ;;  %v317_v59 = vadd.f32 %v316_v49, %v3382_v58 }
 0x132   :  { %v319_v52 = vpop.f32.mrb[2].mxu1  ;;  %v2410_v54 = vmul.f32 -1.442695, %v278_v50 }
 0x133   :  { %3004 = vpow2.f32 %v2409_v46  ;;  %v2723_v53 = vpop.f32.mrb[3].mxu1 }
 0x134   :  { %3006 = vpow2.f32 %v2410_v54 }
 0x13d   :  { %v3005_v55 = vpop.eup %3004 }
 0x13e   :  { %v325_v56 = vadd.f32 1.0, %v3005_v55  ;;  %v3007_v60 = vpop.eup %3006 }
 0x13f   :  { %v331_v9 = vadd.f32 1.0, %v3007_v60 }
 0x140   :  { %3008 = vrcp.f32 %v325_v56 }
 0x14a   :  { %v3009_v61 = vpop.eup %3008 }
 0x14b   :  { %v334_v63 = vmul.f32 %v3009_v61, %v317_v59 }
 0x14d   :  { %v335_v12 = vadd.f32 %v334_v63, %v3388_v62 }
 0x14f   :  { %3010 = vtanh.f32 %v335_v12  ;;  %v2925_v12 = vld [vmem:[#allocation6 + $0x20] ss:$12 sps:$4 sm:$0xff]  }
 0x150   :  { %3012 = vrcp.f32 %v331_v9  ;;  %v2924_v9 = vld [vmem:[#allocation6 + $0x8] ss:$12 sps:$4 sm:$0xff]  }
 0x159   :  { %v3011_v14 = vpop.eup %3010 }
 0x15a   :  { %v337_v18 = vsub.f32 %v3334_v23, %v3011_v14  ;;  %v3013_v20 = vpop.eup %3012  ;;  %v2916_v23 = vld [vmem:[#allocation6 + $0x8] ss:$12 sps:$4 sm:$0xff]  }
 0x15c   :  { %v338_v24 = vmul.f32 %v3013_v20, %v337_v18 }
 0x15e   :  { %v3392_v25 = vadd.f32 %v3011_v14, %v338_v24 }
 0x160   :  { %340 = vst [vmem:[#allocation2] sm:$0x1] %v3392_v25  ;;  %341 = vst [vmem:[#allocation2 + $0xf] sm:$0x1] %v3392_v25  ;;  %v342_v26 = vpack.c.bf16 %v3392_v25, %v3392_v25 }
 0x162   :  { %536 = vmatmul.mubr.bf16.vlgmr.msra.gmra.mrb[4].mxu0 %v342_v26  ;;  %2741 = vmatmul.mubr.bf16.vlgmr.msra.gmra.mrb[4].mxu1 %v342_v26 }
 0x163   :  { %766 = vmatpush1.bf16.msra.mxu0 %v3287_v3  ;;  %797 = vmatprep.mubr.bf16.mxu0 %v3211_v1 }
 0x164   :  { %767 = vmatprep.subr.bf16.mxu0 %v3290_v4  ;;  %2760 = vmatprep.mubr.msk.bf16.mxu1 %vm3212_vm0, %v3210_v0 }
 0x165   :  { %2745 = vmatpush3.bf16.msra.mxu1 %v2916_v23 }
 0x166   :  { %2746 = vmatprep.subr.bf16.mxu1 %v3210_v0 }
 0x167   :  { %768 = vmatpush1.bf16.msra.mxu0 %v3293_v5 }
 0x168   :  { %769 = vmatprep.subr.bf16.mxu0 %v3296_v6 }
 0x169   :  { %2747 = vmatpush3.bf16.msra.mxu1 %v2917_v27 }
 0x16a   :  { %2748 = vmatprep.subr.bf16.mxu1 %v3210_v0 }
 0x16b   :  { %770 = vmatpush1.bf16.msra.mxu0 %v3299_v7 }
 0x16c   :  { %771 = vmatprep.subr.bf16.mxu0 %v3302_v8 }
 0x16d   :  { %2749 = vmatpush3.bf16.msra.mxu1 %v2918_v28 }
 0x16e   :  { %2750 = vmatprep.subr.bf16.mxu1 %v3210_v0 }
 0x16f   :  { %772 = vmatpush1.bf16.msra.mxu0 %v3305_v10 }
 0x170   :  { %773 = vmatprep.subr.bf16.mxu0 %v3308_v11 }
 0x171   :  { %2751 = vmatpush3.bf16.msra.mxu1 %v2919_v29 }
 0x172   :  { %2752 = vmatprep.subr.bf16.mxu1 %v3210_v0 }
 0x173   :  { %774 = vmatpush1.bf16.msra.mxu0 %v3311_v13 }
 0x174   :  { %775 = vmatprep.subr.bf16.mxu0 %v3315_v15 }
 0x175   :  { %2753 = vmatpush3.bf16.msra.mxu1 %v2920_v30 }
 0x176   :  { %2754 = vmatprep.subr.bf16.mxu1 %v3210_v0 }
 0x177   :  { %776 = vmatpush1.bf16.msra.mxu0 %v3318_v16 }
 0x178   :  { %777 = vmatprep.subr.bf16.mxu0 %v3320_v17 }
 0x179   :  { %2755 = vmatpush3.bf16.msra.mxu1 %v2921_v31 }
 0x17a   :  { %2756 = vmatprep.subr.bf16.mxu1 %v3210_v0 }
 0x17b   :  { %778 = vmatpush1.bf16.msra.mxu0 %v3325_v19 }
 0x17c   :  { %779 = vmatprep.subr.bf16.mxu0 %v3327_v21 }
 0x17d   :  { %2757 = vmatpush3.bf16.msra.mxu1 %v2922_v32 }
 0x17e   :  { %2758 = vmatprep.subr.bf16.mxu1 %v3210_v0 }
 0x17f   :  { %780 = vmatpush1.bf16.msra.mxu0 %v3332_v22 }
 0x180   :  { %1027 = vmatprep.subr.bf16.mxu0 %v3285_v2 }
 0x181   :  { %2759 = vmatpush3.bf16.msra.mxu1 %v2923_v33 }
 0x182   :  { %2764 = vmatprep.subr.bf16.mxu1 %v3210_v0 }
 0x235   :  { %v537_v34 = vpop.f32.mrb[4].mxu0  ;;  %v578_v35 = vpop.f32.mrb[4].mxu1 }
 0x236   :  { %v538_v36 = vadd.f32 %v537_v34, %v3376_v40  ;;  %v539_v37 = vpop.f32.mrb[5].mxu0  ;;  %v2742_v38 = vpop.f32.mrb[5].mxu1  ;;  %v579_v51 = vadd.f32 %v578_v35, %v3382_v58 }
 0x237   :  { %v541_v39 = vpop.f32.mrb[6].mxu0  ;;  %v581_v41 = vpop.f32.mrb[6].mxu1  ;;  %v540_v45 = vadd.f32 %v539_v37, %v3379_v48 }
 0x238   :  { %v2435_v42 = vmul.f32 -1.442695, %v538_v36  ;;  %v542_v43 = vpop.f32.mrb[7].mxu0  ;;  %v2743_v44 = vpop.f32.mrb[7].mxu1 }
 0x239   :  { %v2436_v46 = vmul.f32 -1.442695, %v540_v45 }
 0x23a   :  { %3014 = vpow2.f32 %v2435_v42 }
 0x23b   :  { %3016 = vpow2.f32 %v2436_v46  ;;  %v3500_v46 = vld [vmem:[#allocation6 + $0x90] ss:$12 sps:$4 sm:$0xff]  }
 0x244   :  { %v3015_v47 = vpop.eup %3014 }
 0x245   :  { %v587_v49 = vadd.f32 1.0, %v3015_v47  ;;  %v3017_v50 = vpop.eup %3016  ;;  %v2944_v47 = vld [vmem:[#allocation6 + $0x98] ss:$12 sps:$4 sm:$0xff]  }
 0x246   :  { %v593_v55 = vadd.f32 1.0, %v3017_v50  ;;  %v3506_v50 = vld [vmem:[#allocation6 + $0xac] ss:$12 sps:$4 sm:$0xff]  }
 0x247   :  { %3018 = vrcp.f32 %v587_v49  ;;  %v3504_v49 = vld [vmem:[#allocation6 + $0xa8] ss:$12 sps:$4 sm:$0xff]  }
 0x251   :  { %v3019_v52 = vpop.eup %3018 }
 0x252   :  { %v596_v53 = vmul.f32 %v3019_v52, %v579_v51  ;;  %v2948_v51 = vld [vmem:[#allocation6 + $0xb0] ss:$12 sps:$4 sm:$0xff]  }
 0x254   :  { %v597_v54 = vadd.f32 %v596_v53, %v3388_v62 }
 0x256   :  { %3020 = vtanh.f32 %v597_v54 }
 0x257   :  { %3022 = vrcp.f32 %v593_v55 }
 0x260   :  { %v3021_v56 = vpop.eup %3020 }
 0x261   :  { %v599_v57 = vsub.f32 %v3392_v25, %v3021_v56  ;;  %v3023_v59 = vpop.eup %3022 }
 0x263   :  { %v600_v60 = vmul.f32 %v3023_v59, %v599_v57 }
 0x265   :  { %v3430_v61 = vadd.f32 %v3021_v56, %v600_v60 }
 0x267   :  { %602 = vst [vmem:[#allocation2 + $0x1] sm:$0x1] %v3430_v61  ;;  %603 = vst [vmem:[#allocation2 + $0xe] sm:$0x1] %v3430_v61  ;;  %v604_v63 = vpack.c.bf16 %v3430_v61, %v3430_v61 }
 0x269   :  { %798 = vmatmul.mubr.bf16.vlgmr.msra.gmra.mrb[8].mxu0 %v604_v63  ;;  %2761 = vmatmul.mubr.bf16.vlgmr.msra.gmra.mrb[8].mxu1 %v604_v63 }
 0x26a   :  { %1028 = vmatpush1.bf16.msra.mxu0 %v3287_v3  ;;  %1059 = vmatprep.mubr.bf16.mxu0 %v3211_v1 }
 0x26b   :  { %1029 = vmatprep.subr.bf16.mxu0 %v3290_v4  ;;  %2780 = vmatprep.mubr.msk.bf16.mxu1 %vm3212_vm0, %v3210_v0 }
 0x26c   :  { %2765 = vmatpush3.bf16.msra.mxu1 %v2924_v9 }
 0x26d   :  { %2766 = vmatprep.subr.bf16.mxu1 %v3210_v0 }
 0x26e   :  { %1030 = vmatpush1.bf16.msra.mxu0 %v3293_v5 }
 0x26f   :  { %1031 = vmatprep.subr.bf16.mxu0 %v3296_v6 }
 0x270   :  { %2767 = vmatpush3.bf16.msra.mxu1 %v2925_v12 }
 0x271   :  { %2768 = vmatprep.subr.bf16.mxu1 %v3210_v0 }
 0x272   :  { %1032 = vmatpush1.bf16.msra.mxu0 %v3299_v7 }
 0x273   :  { %1033 = vmatprep.subr.bf16.mxu0 %v3302_v8 }
 0x276   :  { %1034 = vmatpush1.bf16.msra.mxu0 %v3305_v10 }
 0x277   :  { %1035 = vmatprep.subr.bf16.mxu0 %v3308_v11 }
 0x27a   :  { %1036 = vmatpush1.bf16.msra.mxu0 %v3311_v13 }
 0x27b   :  { %1037 = vmatprep.subr.bf16.mxu0 %v3315_v15  ;;  %v2926_v15 = vld [vmem:[#allocation6 + $0x38] ss:$12 sps:$4 sm:$0xff]  }
 0x27c   :  { %2769 = vmatpush3.bf16.msra.mxu1 %v2926_v15 }
 0x27d   :  { %2770 = vmatprep.subr.bf16.mxu1 %v3210_v0 }
 0x27e   :  { %1038 = vmatpush1.bf16.msra.mxu0 %v3318_v16  ;;  %v2927_v16 = vld [vmem:[#allocation6 + $0x50] ss:$12 sps:$4 sm:$0xff]  }
 0x27f   :  { %1039 = vmatprep.subr.bf16.mxu0 %v3320_v17  ;;  %v2928_v17 = vld [vmem:[#allocation6 + $0x68] ss:$12 sps:$4 sm:$0xff]  }
 0x280   :  { %2771 = vmatpush3.bf16.msra.mxu1 %v2927_v16 }
 0x281   :  { %2772 = vmatprep.subr.bf16.mxu1 %v3210_v0 }
 0x282   :  { %1040 = vmatpush1.bf16.msra.mxu0 %v3325_v19  ;;  %v2930_v19 = vld [vmem:[#allocation6 + $0x98] ss:$12 sps:$4 sm:$0xff]  }
 0x283   :  { %1041 = vmatprep.subr.bf16.mxu0 %v3327_v21  ;;  %v2931_v21 = vld [vmem:[#allocation6 + $0xb0] ss:$12 sps:$4 sm:$0xff]  }
 0x284   :  { %2773 = vmatpush3.bf16.msra.mxu1 %v2928_v17 }
 0x285   :  { %2774 = vmatprep.subr.bf16.mxu1 %v3210_v0 }
 0x286   :  { %1042 = vmatpush1.bf16.msra.mxu0 %v3332_v22 }
 0x287   :  { %1289 = vmatprep.subr.bf16.mxu0 %v3285_v2  ;;  %v2929_v2 = vld [vmem:[#allocation6 + $0x80] ss:$12 sps:$4 sm:$0xff]  }
 0x288   :  { %2775 = vmatpush3.bf16.msra.mxu1 %v2929_v2 }
 0x289   :  { %2776 = vmatprep.subr.bf16.mxu1 %v3210_v0 }
 0x28c   :  { %2777 = vmatpush3.bf16.msra.mxu1 %v2930_v19 }
 0x28d   :  { %2778 = vmatprep.subr.bf16.mxu1 %v3210_v0 }
 0x290   :  { %2779 = vmatpush3.bf16.msra.mxu1 %v2931_v21 }
 0x291   :  { %2784 = vmatprep.subr.bf16.mxu1 %v3210_v0 }
 0x33c   :  { %v799_v22 = vpop.f32.mrb[8].mxu0  ;;  %v840_v14 = vpop.f32.mrb[8].mxu1 }
 0x33d   :  { %v800_v18 = vadd.f32 %v799_v22, %v3376_v40  ;;  %v801_v20 = vpop.f32.mrb[9].mxu0  ;;  %v2762_v24 = vpop.f32.mrb[9].mxu1  ;;  %v841_v34 = vadd.f32 %v840_v14, %v3382_v58 }
 0x33e   :  { %v803_v25 = vpop.f32.mrb[10].mxu0  ;;  %v843_v26 = vpop.f32.mrb[10].mxu1  ;;  %v802_v29 = vadd.f32 %v801_v20, %v3379_v48 }
 0x33f   :  { %v2461_v23 = vmul.f32 -1.442695, %v800_v18  ;;  %v804_v27 = vpop.f32.mrb[11].mxu0  ;;  %v2763_v28 = vpop.f32.mrb[11].mxu1 }
 0x340   :  { %v2462_v30 = vmul.f32 -1.442695, %v802_v29  ;;  %v3526_v27 = vld [vmem:[#allocation6 + $0x4] ss:$12 sps:$4 sm:$0xff]   ;;  %v3528_v28 = vld [vmem:[#allocation6] ss:$12 sps:$4 sm:$0xff]  }
 0x341   :  { %3024 = vpow2.f32 %v2461_v23  ;;  %v2952_v29 = vld [vmem:[#allocation6 + $0x8] ss:$12 sps:$4 sm:$0xff]  }
 0x342   :  { %3026 = vpow2.f32 %v2462_v30  ;;  %v3532_v30 = vld [vmem:[#allocation6 + $0x1c] ss:$12 sps:$4 sm:$0xff]  }
 0x34b   :  { %v3025_v31 = vpop.eup %3024 }
 0x34c   :  { %v849_v32 = vadd.f32 1.0, %v3025_v31  ;;  %v3027_v33 = vpop.eup %3026  ;;  %v3535_v31 = vld [vmem:[#allocation6 + $0x18] ss:$12 sps:$4 sm:$0xff]  }
 0x34d   :  { %v855_v38 = vadd.f32 1.0, %v3027_v33  ;;  %v3539_v33 = vld [vmem:[#allocation6 + $0x34] ss:$12 sps:$4 sm:$0xff]  }
 0x34e   :  { %3028 = vrcp.f32 %v849_v32  ;;  %v2956_v32 = vld [vmem:[#allocation6 + $0x20] ss:$12 sps:$4 sm:$0xff]  }
 0x358   :  { %v3029_v35 = vpop.eup %3028 }
 0x359   :  { %v858_v36 = vmul.f32 %v3029_v35, %v841_v34  ;;  %v3542_v34 = vld [vmem:[#allocation6 + $0x30] ss:$12 sps:$4 sm:$0xff]   ;;  %v2960_v35 = vld [vmem:[#allocation6 + $0x38] ss:$12 sps:$4 sm:$0xff]  }
 0x35b   :  { %v859_v37 = vadd.f32 %v858_v36, %v3388_v62  ;;  %v3546_v36 = vld [vmem:[#allocation6 + $0x4c] ss:$12 sps:$4 sm:$0xff]  }
 0x35d   :  { %3030 = vtanh.f32 %v859_v37  ;;  %v3549_v37 = vld [vmem:[#allocation6 + $0x48] ss:$12 sps:$4 sm:$0xff]  }
 0x35e   :  { %3032 = vrcp.f32 %v855_v38  ;;  %v2964_v38 = vld [vmem:[#allocation6 + $0x50] ss:$12 sps:$4 sm:$0xff]  }
 0x367   :  { %v3031_v39 = vpop.eup %3030 }
 0x368   :  { %v861_v41 = vsub.f32 %v3430_v61, %v3031_v39  ;;  %v3033_v42 = vpop.eup %3032 }
 0x36a   :  { %v862_v43 = vmul.f32 %v3033_v42, %v861_v41  ;;  %v3556_v41 = vld [vmem:[#allocation6 + $0x60] ss:$12 sps:$4 sm:$0xff]   ;;  %v2968_v42 = vld [vmem:[#allocation6 + $0x68] ss:$12 sps:$4 sm:$0xff]  }
 0x36c   :  { %v3468_v44 = vadd.f32 %v3031_v39, %v862_v43  ;;  %v3553_v39 = vld [vmem:[#allocation6 + $0x64] ss:$12 sps:$4 sm:$0xff]   ;;  %v2969_v43 = vld [vmem:[#allocation6 + $0x80] ss:$12 sps:$4 sm:$0xff]  }
 0x36e   :  { %864 = vst [vmem:[#allocation2 + $0x2] sm:$0x1] %v3468_v44  ;;  %865 = vst [vmem:[#allocation2 + $0xd] sm:$0x1] %v3468_v44  ;;  %v866_v45 = vpack.c.bf16 %v3468_v44, %v3468_v44 }
 0x370   :  { %1060 = vmatmul.mubr.bf16.vlgmr.msra.gmra.mrb[12].mxu0 %v866_v45  ;;  %2781 = vmatmul.mubr.bf16.vlgmr.msra.gmra.mrb[12].mxu1 %v866_v45  ;;  %v2971_v45 = vld [vmem:[#allocation6 + $0xb0] ss:$12 sps:$4 sm:$0xff]  }
 0x371   :  { %1290 = vmatpush1.bf16.msra.mxu0 %v3287_v3  ;;  %1321 = vmatprep.mubr.bf16.mxu0 %v3211_v1  ;;  %v2932_v3 = vld [vmem:[#allocation6 + $0x8] ss:$12 sps:$4 sm:$0xff]  }
 0x372   :  { %1291 = vmatprep.subr.bf16.mxu0 %v3290_v4  ;;  %2800 = vmatprep.mubr.msk.bf16.mxu1 %vm3212_vm0, %v3210_v0  ;;  %v2933_v4 = vld [vmem:[#allocation6 + $0x20] ss:$12 sps:$4 sm:$0xff]  }
 0x373   :  { %2785 = vmatpush3.bf16.msra.mxu1 %v2932_v3 }
 0x374   :  { %2786 = vmatprep.subr.bf16.mxu1 %v3210_v0 }
 0x375   :  { %1292 = vmatpush1.bf16.msra.mxu0 %v3293_v5  ;;  %v2934_v5 = vld [vmem:[#allocation6 + $0x38] ss:$12 sps:$4 sm:$0xff]  }
 0x376   :  { %1293 = vmatprep.subr.bf16.mxu0 %v3296_v6  ;;  %v2935_v6 = vld [vmem:[#allocation6 + $0x50] ss:$12 sps:$4 sm:$0xff]  }
 0x377   :  { %2787 = vmatpush3.bf16.msra.mxu1 %v2933_v4 }
 0x378   :  { %2788 = vmatprep.subr.bf16.mxu1 %v3210_v0 }
 0x379   :  { %1294 = vmatpush1.bf16.msra.mxu0 %v3299_v7  ;;  %v2936_v7 = vld [vmem:[#allocation6 + $0x68] ss:$12 sps:$4 sm:$0xff]  }
 0x37a   :  { %1295 = vmatprep.subr.bf16.mxu0 %v3302_v8  ;;  %v3490_v8 = vld [vmem:[#allocation6 + $0x7c] ss:$12 sps:$4 sm:$0xff]  }
 0x37b   :  { %2789 = vmatpush3.bf16.msra.mxu1 %v2934_v5 }
 0x37c   :  { %2790 = vmatprep.subr.bf16.mxu1 %v3210_v0 }
 0x37d   :  { %1296 = vmatpush1.bf16.msra.mxu0 %v3305_v10  ;;  %v3493_v10 = vld [vmem:[#allocation6 + $0x78] ss:$12 sps:$4 sm:$0xff]  }
 0x37e   :  { %1297 = vmatprep.subr.bf16.mxu0 %v3308_v11  ;;  %v2940_v11 = vld [vmem:[#allocation6 + $0x80] ss:$12 sps:$4 sm:$0xff]  }
 0x37f   :  { %2791 = vmatpush3.bf16.msra.mxu1 %v2935_v6 }
 0x380   :  { %2792 = vmatprep.subr.bf16.mxu1 %v3210_v0 }
 0x381   :  { %1298 = vmatpush1.bf16.msra.mxu0 %v3311_v13  ;;  %v3497_v13 = vld [vmem:[#allocation6 + $0x94] ss:$12 sps:$4 sm:$0xff]  }
 0x382   :  { %1299 = vmatprep.subr.bf16.mxu0 %v3490_v8 }
 0x383   :  { %2793 = vmatpush3.bf16.msra.mxu1 %v2936_v7 }
 0x384   :  { %2794 = vmatprep.subr.bf16.mxu1 %v3210_v0 }
 0x385   :  { %1300 = vmatpush1.bf16.msra.mxu0 %v3493_v10 }
 0x386   :  { %1301 = vmatprep.subr.bf16.mxu0 %v3497_v13 }
 0x387   :  { %2795 = vmatpush3.bf16.msra.mxu1 %v2940_v11 }
 0x388   :  { %2796 = vmatprep.subr.bf16.mxu1 %v3210_v0 }
 0x389   :  { %1302 = vmatpush1.bf16.msra.mxu0 %v3500_v46 }
 0x38a   :  { %1303 = vmatprep.subr.bf16.mxu0 %v3506_v50 }
 0x38b   :  { %2797 = vmatpush3.bf16.msra.mxu1 %v2944_v47 }
 0x38c   :  { %2798 = vmatprep.subr.bf16.mxu1 %v3210_v0 }
 0x38d   :  { %1304 = vmatpush1.bf16.msra.mxu0 %v3504_v49 }
 0x38e   :  { %1551 = vmatprep.subr.bf16.mxu0 %v3526_v27 }
 0x38f   :  { %2799 = vmatpush3.bf16.msra.mxu1 %v2948_v51 }
 0x390   :  { %2804 = vmatprep.subr.bf16.mxu1 %v3210_v0 }
 0x443   :  { %v1061_v52 = vpop.f32.mrb[12].mxu0  ;;  %v1102_v53 = vpop.f32.mrb[12].mxu1 }
 0x444   :  { %v1062_v54 = vadd.f32 %v1061_v52, %v3376_v40  ;;  %v1063_v55 = vpop.f32.mrb[13].mxu0  ;;  %v2782_v56 = vpop.f32.mrb[13].mxu1  ;;  %v1103_v2 = vadd.f32 %v1102_v53, %v3382_v58 }
 0x445   :  { %v1065_v57 = vpop.f32.mrb[14].mxu0  ;;  %v1105_v59 = vpop.f32.mrb[14].mxu1  ;;  %v1064_v9 = vadd.f32 %v1063_v55, %v3379_v48 }
 0x446   :  { %v2487_v60 = vmul.f32 -1.442695, %v1062_v54  ;;  %v1066_v61 = vpop.f32.mrb[15].mxu0  ;;  %v2783_v63 = vpop.f32.mrb[15].mxu1 }
 0x447   :  { %v2488_v12 = vmul.f32 -1.442695, %v1064_v9 }
 0x448   :  { %3034 = vpow2.f32 %v2487_v60 }
 0x449   :  { %3036 = vpow2.f32 %v2488_v12 }
 0x452   :  { %v3035_v15 = vpop.eup %3034 }
 0x453   :  { %v1111_v16 = vadd.f32 1.0, %v3035_v15  ;;  %v3037_v17 = vpop.eup %3036 }
 0x454   :  { %v1117_v14 = vadd.f32 1.0, %v3037_v17 }
 0x455   :  { %3038 = vrcp.f32 %v1111_v16 }
 0x45f   :  { %v3039_v19 = vpop.eup %3038 }
 0x460   :  { %v1120_v21 = vmul.f32 %v3039_v19, %v1103_v2 }
 0x462   :  { %v1121_v22 = vadd.f32 %v1120_v21, %v3388_v62 }
 0x464   :  { %3040 = vtanh.f32 %v1121_v22  ;;  %v2972_v22 = vld [vmem:[#allocation6 + $0x8] ss:$12 sps:$4 sm:$0xff]  }
 0x465   :  { %3042 = vrcp.f32 %v1117_v14  ;;  %v2973_v14 = vld [vmem:[#allocation6 + $0x20] ss:$12 sps:$4 sm:$0xff]  }
 0x46e   :  { %v3041_v18 = vpop.eup %3040 }
 0x46f   :  { %v1123_v20 = vsub.f32 %v3468_v44, %v3041_v18  ;;  %v3043_v24 = vpop.eup %3042  ;;  %v2970_v44 = vld [vmem:[#allocation6 + $0x98] ss:$12 sps:$4 sm:$0xff]  }
 0x471   :  { %v1124_v25 = vmul.f32 %v3043_v24, %v1123_v20  ;;  %v2975_v20 = vld [vmem:[#allocation6 + $0x50] ss:$12 sps:$4 sm:$0xff]   ;;  %v2976_v24 = vld [vmem:[#allocation6 + $0x68] ss:$12 sps:$4 sm:$0xff]  }
 0x473   :  { %v3517_v26 = vadd.f32 %v3041_v18, %v1124_v25  ;;  %v2974_v18 = vld [vmem:[#allocation6 + $0x38] ss:$12 sps:$4 sm:$0xff]   ;;  %v2977_v25 = vld [vmem:[#allocation6 + $0x80] ss:$12 sps:$4 sm:$0xff]  }
 0x475   :  { %1126 = vst [vmem:[#allocation2 + $0x3] sm:$0x1] %v3517_v26  ;;  %1127 = vst [vmem:[#allocation2 + $0xc] sm:$0x1] %v3517_v26  ;;  %v1128_v23 = vpack.c.bf16 %v3517_v26, %v3517_v26 }
 0x477   :  { %1322 = vmatmul.mubr.bf16.vlgmr.msra.gmra.mrb[16].mxu0 %v1128_v23  ;;  %2801 = vmatmul.mubr.bf16.vlgmr.msra.gmra.mrb[16].mxu1 %v1128_v23  ;;  %v2979_v23 = vld [vmem:[#allocation6 + $0xb0] ss:$12 sps:$4 sm:$0xff]  }
 0x478   :  { %1583 = vmatprep.mubr.bf16.mxu0 %v3211_v1  ;;  %2820 = vmatprep.mubr.msk.bf16.mxu1 %vm3212_vm0, %v3210_v0 }
 0x479   :  { %1552 = vmatpush1.bf16.msra.mxu0 %v3528_v28  ;;  %2805 = vmatpush3.bf16.msra.mxu1 %v2952_v29 }
 0x47a   :  { %2806 = vmatprep.subr.bf16.mxu1 %v3210_v0  ;;  %1553 = vmatprep.subr.bf16.mxu0 %v3532_v30 }
 0x47d   :  { %1554 = vmatpush1.bf16.msra.mxu0 %v3535_v31  ;;  %2807 = vmatpush3.bf16.msra.mxu1 %v2956_v32 }
 0x47e   :  { %2808 = vmatprep.subr.bf16.mxu1 %v3210_v0  ;;  %1555 = vmatprep.subr.bf16.mxu0 %v3539_v33 }
 0x481   :  { %1556 = vmatpush1.bf16.msra.mxu0 %v3542_v34  ;;  %2809 = vmatpush3.bf16.msra.mxu1 %v2960_v35 }
 0x482   :  { %2810 = vmatprep.subr.bf16.mxu1 %v3210_v0  ;;  %1557 = vmatprep.subr.bf16.mxu0 %v3546_v36 }
 0x485   :  { %1558 = vmatpush1.bf16.msra.mxu0 %v3549_v37  ;;  %2811 = vmatpush3.bf16.msra.mxu1 %v2964_v38 }
 0x486   :  { %2812 = vmatprep.subr.bf16.mxu1 %v3210_v0  ;;  %1559 = vmatprep.subr.bf16.mxu0 %v3553_v39 }
 0x489   :  { %1560 = vmatpush1.bf16.msra.mxu0 %v3556_v41  ;;  %2813 = vmatpush3.bf16.msra.mxu1 %v2968_v42 }
 0x48a   :  { %1561 = vmatprep.subr.bf16.mxu0 %v3490_v8  ;;  %2814 = vmatprep.subr.bf16.mxu1 %v3210_v0 }
 0x48d   :  { %1562 = vmatpush1.bf16.msra.mxu0 %v3493_v10  ;;  %2815 = vmatpush3.bf16.msra.mxu1 %v2969_v43 }
 0x48e   :  { %1563 = vmatprep.subr.bf16.mxu0 %v3497_v13  ;;  %2816 = vmatprep.subr.bf16.mxu1 %v3210_v0 }
 0x491   :  { %1564 = vmatpush1.bf16.msra.mxu0 %v3500_v46  ;;  %2817 = vmatpush3.bf16.msra.mxu1 %v2970_v44 }
 0x492   :  { %1565 = vmatprep.subr.bf16.mxu0 %v3506_v50  ;;  %2818 = vmatprep.subr.bf16.mxu1 %v3210_v0 }
 0x495   :  { %1566 = vmatpush1.bf16.msra.mxu0 %v3504_v49  ;;  %2819 = vmatpush3.bf16.msra.mxu1 %v2971_v45 }
 0x496   :  { %1813 = vmatprep.subr.bf16.mxu0 %v3526_v27  ;;  %2824 = vmatprep.subr.bf16.mxu1 %v3210_v0 }
 0x54a   :  { %v1323_v3 = vpop.f32.mrb[16].mxu0  ;;  %v1364_v4 = vpop.f32.mrb[16].mxu1 }
 0x54b   :  { %v1324_v5 = vadd.f32 %v1323_v3, %v3376_v40  ;;  %v1325_v6 = vpop.f32.mrb[17].mxu0  ;;  %v2802_v7 = vpop.f32.mrb[17].mxu1  ;;  %v1365_v60 = vadd.f32 %v1364_v4, %v3382_v58 }
 0x54c   :  { %v1327_v11 = vpop.f32.mrb[18].mxu0  ;;  %v1367_v47 = vpop.f32.mrb[18].mxu1  ;;  %v1326_v54 = vadd.f32 %v1325_v6, %v3379_v48 }
 0x54d   :  { %v2513_v51 = vmul.f32 -1.442695, %v1324_v5  ;;  %v1328_v52 = vpop.f32.mrb[19].mxu0  ;;  %v2803_v53 = vpop.f32.mrb[19].mxu1 }
 0x54e   :  { %v2514_v55 = vmul.f32 -1.442695, %v1326_v54 }
 0x54f   :  { %3044 = vpow2.f32 %v2513_v51 }
 0x550   :  { %3046 = vpow2.f32 %v2514_v55 }
 0x559   :  { %v3045_v56 = vpop.eup %3044 }
 0x55a   :  { %v1373_v57 = vadd.f32 1.0, %v3045_v56  ;;  %v3047_v59 = vpop.eup %3046 }
 0x55b   :  { %v1379_v12 = vadd.f32 1.0, %v3047_v59 }
 0x55c   :  { %3048 = vrcp.f32 %v1373_v57 }
 0x566   :  { %v3049_v61 = vpop.eup %3048 }
 0x567   :  { %v1382_v63 = vmul.f32 %v3049_v61, %v1365_v60 }
 0x569   :  { %v1383_v9 = vadd.f32 %v1382_v63, %v3388_v62 }
 0x56b   :  { %3050 = vtanh.f32 %v1383_v9 }
 0x56c   :  { %3052 = vrcp.f32 %v1379_v12 }
 0x575   :  { %v3051_v15 = vpop.eup %3050 }
 0x576   :  { %v1385_v16 = vsub.f32 %v3517_v26, %v3051_v15  ;;  %v3053_v17 = vpop.eup %3052  ;;  %v2978_v26 = vld [vmem:[#allocation6 + $0x98] ss:$12 sps:$4 sm:$0xff]  }
 0x578   :  { %v1386_v2 = vmul.f32 %v3053_v17, %v1385_v16 }
 0x57a   :  { %v3576_v19 = vadd.f32 %v3051_v15, %v1386_v2 }
 0x57c   :  { %1388 = vst [vmem:[#allocation2 + $0x4] sm:$0x1] %v3576_v19  ;;  %1389 = vst [vmem:[#allocation2 + $0xb] sm:$0x1] %v3576_v19  ;;  %v1390_v21 = vpack.c.bf16 %v3576_v19, %v3576_v19 }
 0x57e   :  { %1584 = vmatmul.mubr.bf16.vlgmr.msra.gmra.mrb[20].mxu0 %v1390_v21  ;;  %2821 = vmatmul.mubr.bf16.vlgmr.msra.gmra.mrb[20].mxu1 %v1390_v21 }
 0x57f   :  { %1814 = vmatpush1.bf16.msra.mxu0 %v3528_v28  ;;  %1845 = vmatprep.mubr.bf16.mxu0 %v3211_v1 }
 0x580   :  { %1815 = vmatprep.subr.bf16.mxu0 %v3532_v30  ;;  %2840 = vmatprep.mubr.msk.bf16.mxu1 %vm3212_vm0, %v3210_v0 }
 0x581   :  { %2825 = vmatpush3.bf16.msra.mxu1 %v2972_v22 }
 0x582   :  { %2826 = vmatprep.subr.bf16.mxu1 %v3210_v0 }
 0x583   :  { %1816 = vmatpush1.bf16.msra.mxu0 %v3535_v31 }
 0x584   :  { %1817 = vmatprep.subr.bf16.mxu0 %v3539_v33 }
 0x585   :  { %2827 = vmatpush3.bf16.msra.mxu1 %v2973_v14 }
 0x586   :  { %2828 = vmatprep.subr.bf16.mxu1 %v3210_v0 }
 0x587   :  { %1818 = vmatpush1.bf16.msra.mxu0 %v3542_v34 }
 0x588   :  { %1819 = vmatprep.subr.bf16.mxu0 %v3546_v36 }
 0x589   :  { %2829 = vmatpush3.bf16.msra.mxu1 %v2974_v18 }
 0x58a   :  { %2830 = vmatprep.subr.bf16.mxu1 %v3210_v0 }
 0x58b   :  { %1820 = vmatpush1.bf16.msra.mxu0 %v3549_v37 }
 0x58c   :  { %1821 = vmatprep.subr.bf16.mxu0 %v3553_v39 }
 0x58d   :  { %2831 = vmatpush3.bf16.msra.mxu1 %v2975_v20 }
 0x58e   :  { %2832 = vmatprep.subr.bf16.mxu1 %v3210_v0 }
 0x58f   :  { %1822 = vmatpush1.bf16.msra.mxu0 %v3556_v41 }
 0x590   :  { %1823 = vmatprep.subr.bf16.mxu0 %v3490_v8 }
 0x591   :  { %2833 = vmatpush3.bf16.msra.mxu1 %v2976_v24 }
 0x592   :  { %2834 = vmatprep.subr.bf16.mxu1 %v3210_v0 }
 0x593   :  { %1824 = vmatpush1.bf16.msra.mxu0 %v3493_v10 }
 0x594   :  { %1825 = vmatprep.subr.bf16.mxu0 %v3497_v13 }
 0x595   :  { %2835 = vmatpush3.bf16.msra.mxu1 %v2977_v25 }
 0x596   :  { %2836 = vmatprep.subr.bf16.mxu1 %v3210_v0 }
 0x597   :  { %1826 = vmatpush1.bf16.msra.mxu0 %v3500_v46 }
 0x598   :  { %1827 = vmatprep.subr.bf16.mxu0 %v3506_v50 }
 0x599   :  { %2837 = vmatpush3.bf16.msra.mxu1 %v2978_v26 }
 0x59a   :  { %2838 = vmatprep.subr.bf16.mxu1 %v3210_v0 }
 0x59b   :  { %1828 = vmatpush1.bf16.msra.mxu0 %v3504_v49 }
 0x59c   :  { %2075 = vmatprep.subr.bf16.mxu0 %v3526_v27 }
 0x59d   :  { %2839 = vmatpush3.bf16.msra.mxu1 %v2979_v23 }
 0x59e   :  { %2844 = vmatprep.subr.bf16.mxu1 %v3210_v0 }
 0x651   :  { %v1585_v27 = vpop.f32.mrb[20].mxu0  ;;  %v1626_v29 = vpop.f32.mrb[20].mxu1 }
 0x652   :  { %v1586_v32 = vadd.f32 %v1585_v27, %v3376_v40  ;;  %v1587_v35 = vpop.f32.mrb[21].mxu0  ;;  %v2822_v38 = vpop.f32.mrb[21].mxu1  ;;  %v1627_v47 = vadd.f32 %v1626_v29, %v3382_v58  ;;  %v2989_v27 = vld [vmem:[#allocation8] sm:$0xff]   ;;  %v2990_v29 = vld [vmem:[#allocation8 + $0x48] sm:$0xff]  }
 0x653   :  { %v1589_v42 = vpop.f32.mrb[22].mxu0  ;;  %v1629_v43 = vpop.f32.mrb[22].mxu1  ;;  %v1588_v4 = vadd.f32 %v1587_v35, %v3379_v48  ;;  %v2992_v35 = vld [vmem:[#allocation8 + $0x50] sm:$0xff]  }
 0x654   :  { %v2539_v44 = vmul.f32 -1.442695, %v1586_v32  ;;  %v1590_v45 = vpop.f32.mrb[23].mxu0  ;;  %v2823_v3 = vpop.f32.mrb[23].mxu1  ;;  %v2991_v32 = vld [vmem:[#allocation8 + $0x8] sm:$0xff]   ;;  %v2993_v38 = vld [vmem:[#allocation8 + $0x10] sm:$0xff]  }
 0x655   :  { %v2540_v5 = vmul.f32 -1.442695, %v1588_v4  ;;  %v2994_v42 = vld [vmem:[#allocation8 + $0x58] sm:$0xff]   ;;  %v2997_v45 = vld [vmem:[#allocation8 + $0x20] sm:$0xff]   ;;  %v2998_v3 = vld [vmem:[#allocation8 + $0x68] sm:$0xff]  }
 0x656   :  { %3054 = vpow2.f32 %v2539_v44  ;;  %v2995_v43 = vld [vmem:[#allocation8 + $0x18] sm:$0xff]   ;;  %v2996_v44 = vld [vmem:[#allocation8 + $0x60] sm:$0xff]   ;;  %v2999_v4 = vld [vmem:[#allocation8 + $0x28] sm:$0xff]  }
 0x657   :  { %3056 = vpow2.f32 %v2540_v5  ;;  %v3000_v5 = vld [vmem:[#allocation8 + $0x70] sm:$0xff]  }
 0x660   :  { %v3055_v6 = vpop.eup %3054 }
 0x661   :  { %v1635_v7 = vadd.f32 1.0, %v3055_v6  ;;  %v3057_v11 = vpop.eup %3056  ;;  %v3001_v6 = vld [vmem:[#allocation8 + $0x30] sm:$0xff]  }
 0x662   :  { %v1641_v54 = vadd.f32 1.0, %v3057_v11  ;;  %v3003_v11 = vld [vmem:[#allocation8 + $0x38] sm:$0xff]  }
 0x663   :  { %3058 = vrcp.f32 %v1635_v7  ;;  %v3002_v7 = vld [vmem:[#allocation8 + $0x78] sm:$0xff]  }
 0x66d   :  { %v3059_v51 = vpop.eup %3058 }
 0x66e   :  { %v1644_v52 = vmul.f32 %v3059_v51, %v1627_v47 }
 0x670   :  { %v1645_v53 = vadd.f32 %v1644_v52, %v3388_v62 }
 0x672   :  { %3060 = vtanh.f32 %v1645_v53 }
 0x673   :  { %3062 = vrcp.f32 %v1641_v54 }
 0x67c   :  { %v3061_v55 = vpop.eup %3060 }
 0x67d   :  { %v1647_v56 = vsub.f32 %v3576_v19, %v3061_v55  ;;  %v3063_v57 = vpop.eup %3062 }
 0x67f   :  { %v1648_v59 = vmul.f32 %v3063_v57, %v1647_v56 }
 0x681   :  { %v3614_v60 = vadd.f32 %v3061_v55, %v1648_v59 }
 0x683   :  { %1650 = vst [vmem:[#allocation2 + $0x5] sm:$0x1] %v3614_v60  ;;  %1651 = vst [vmem:[#allocation2 + $0xa] sm:$0x1] %v3614_v60  ;;  %v1652_v61 = vpack.c.bf16 %v3614_v60, %v3614_v60 }
 0x685   :  { %1846 = vmatmul.mubr.bf16.vlgmr.msra.gmra.mrb[24].mxu0 %v1652_v61  ;;  %2841 = vmatmul.mubr.bf16.vlgmr.msra.gmra.mrb[24].mxu1 %v1652_v61 }
 0x686   :  { %2076 = vmatpush1.bf16.msra.mxu0 %v3528_v28  ;;  %2107 = vmatprep.mubr.bf16.mxu0 %v3211_v1  ;;  %v2980_v1 = vld [vmem:[#allocation6 + $0x8] ss:$12 sps:$4 sm:$0xff]   ;;  %v2981_v28 = vld [vmem:[#allocation6 + $0x20] ss:$12 sps:$4 sm:$0xff]  }
 0x687   :  { %2077 = vmatprep.subr.bf16.mxu0 %v3532_v30  ;;  %2860 = vmatprep.mubr.msk.bf16.mxu1 %vm3212_vm0, %v3210_v0  ;;  %v2982_v30 = vld [vmem:[#allocation6 + $0x38] ss:$12 sps:$4 sm:$0xff]  }
 0x688   :  { %2845 = vmatpush3.bf16.msra.mxu1 %v2980_v1 }
 0x689   :  { %2846 = vmatprep.subr.bf16.mxu1 %v3210_v0 }
 0x68a   :  { %2078 = vmatpush1.bf16.msra.mxu0 %v3535_v31 }
 0x68b   :  { %2079 = vmatprep.subr.bf16.mxu0 %v3539_v33 }
 0x68c   :  { %2847 = vmatpush3.bf16.msra.mxu1 %v2981_v28 }
 0x68d   :  { %2848 = vmatprep.subr.bf16.mxu1 %v3210_v0 }
 0x68e   :  { %2080 = vmatpush1.bf16.msra.mxu0 %v3542_v34 }
 0x68f   :  { %2081 = vmatprep.subr.bf16.mxu0 %v3546_v36 }
 0x690   :  { %2849 = vmatpush3.bf16.msra.mxu1 %v2982_v30 }
 0x691   :  { %2850 = vmatprep.subr.bf16.mxu1 %v3210_v0 }
 0x692   :  { %2082 = vmatpush1.bf16.msra.mxu0 %v3549_v37 }
 0x693   :  { %2083 = vmatprep.subr.bf16.mxu0 %v3553_v39 }
 0x696   :  { %2084 = vmatpush1.bf16.msra.mxu0 %v3556_v41 }
 0x697   :  { %2085 = vmatprep.subr.bf16.mxu0 %v3490_v8  ;;  %v2983_v8 = vld [vmem:[#allocation6 + $0x50] ss:$12 sps:$4 sm:$0xff]  }
 0x698   :  { %2851 = vmatpush3.bf16.msra.mxu1 %v2983_v8 }
 0x699   :  { %2852 = vmatprep.subr.bf16.mxu1 %v3210_v0 }
 0x69a   :  { %2086 = vmatpush1.bf16.msra.mxu0 %v3493_v10  ;;  %v2984_v10 = vld [vmem:[#allocation6 + $0x68] ss:$12 sps:$4 sm:$0xff]  }
 0x69b   :  { %2087 = vmatprep.subr.bf16.mxu0 %v3497_v13  ;;  %v2985_v13 = vld [vmem:[#allocation6 + $0x80] ss:$12 sps:$4 sm:$0xff]  }
 0x69c   :  { %2853 = vmatpush3.bf16.msra.mxu1 %v2984_v10 }
 0x69d   :  { %2854 = vmatprep.subr.bf16.mxu1 %v3210_v0 }
 0x69e   :  { %2088 = vmatpush1.bf16.msra.mxu0 %v3500_v46  ;;  %v2986_v46 = vld [vmem:[#allocation6 + $0x98] ss:$12 sps:$4 sm:$0xff]  }
 0x69f   :  { %2089 = vmatprep.subr.bf16.mxu0 %v3506_v50 }
 0x6a0   :  { %2855 = vmatpush3.bf16.msra.mxu1 %v2985_v13 }
 0x6a1   :  { %2856 = vmatprep.subr.bf16.mxu1 %v3210_v0 }
 0x6a2   :  { %2090 = vmatpush1.bf16.msra.mxu0 %v3504_v49  ;;  %v2987_v49 = vld [vmem:[#allocation6 + $0xb0] ss:$12 sps:$4 sm:$0xff]  }
 0x6a4   :  { %2857 = vmatpush3.bf16.msra.mxu1 %v2986_v46  ;;  %v3084_v46 = vld [vmem:[%s3692_s2 + $0x1] sm:$0x1] }
 0x6a5   :  { %2858 = vmatprep.subr.bf16.mxu1 %v3210_v0 }
 0x6a8   :  { %2859 = vmatpush3.bf16.msra.mxu1 %v2987_v49 }
 0x758   :  { %v1847_v50 = vpop.f32.mrb[24].mxu0  ;;  %v1888_v31 = vpop.f32.mrb[24].mxu1 }
 0x759   :  { %v1848_v33 = vadd.f32 %v1847_v50, %v3376_v40  ;;  %v1849_v34 = vpop.f32.mrb[25].mxu0  ;;  %v2842_v36 = vpop.f32.mrb[25].mxu1  ;;  %v1889_v2 = vadd.f32 %v1888_v31, %v3382_v58 }
 0x75a   :  { %v1851_v37 = vpop.f32.mrb[26].mxu0  ;;  %v1891_v39 = vpop.f32.mrb[26].mxu1  ;;  %v1850_v12 = vadd.f32 %v1849_v34, %v3379_v48 }
 0x75b   :  { %v2565_v41 = vmul.f32 -1.442695, %v1848_v33  ;;  %v1852_v63 = vpop.f32.mrb[27].mxu0  ;;  %v2843_v9 = vpop.f32.mrb[27].mxu1 }
 0x75c   :  { %v2566_v15 = vmul.f32 -1.442695, %v1850_v12 }
 0x75d   :  { %3064 = vpow2.f32 %v2565_v41 }
 0x75e   :  { %3066 = vpow2.f32 %v2566_v15 }
 0x767   :  { %v3065_v16 = vpop.eup %3064 }
 0x768   :  { %v1897_v17 = vadd.f32 1.0, %v3065_v16  ;;  %v3067_v0 = vpop.eup %3066 }
 0x769   :  { %v1903_v14 = vadd.f32 1.0, %v3067_v0 }
 0x76a   :  { %3068 = vrcp.f32 %v1897_v17 }
 0x774   :  { %v3069_v19 = vpop.eup %3068 }
 0x775   :  { %v1906_v21 = vmul.f32 %v3069_v19, %v1889_v2 }
 0x777   :  { %v1907_v22 = vadd.f32 %v1906_v21, %v3388_v62  ;;  %v2988_v62 = vld [vmem:[#allocation8 + $0x40] sm:$0xff]  }
 0x778   :  { %2682 = vmatprep.subr.bf16.mxu0 %v2988_v62 }
 0x779   :  { %3070 = vtanh.f32 %v1907_v22 }
 0x77a   :  { %3072 = vrcp.f32 %v1903_v14 }
 0x783   :  { %v3071_v18 = vpop.eup %3070 }
 0x784   :  { %v1909_v20 = vsub.f32 %v3614_v60, %v3071_v18  ;;  %v3073_v24 = vpop.eup %3072 }
 0x786   :  { %v1910_v25 = vmul.f32 %v3073_v24, %v1909_v20 }
 0x788   :  { %v3650_v26 = vadd.f32 %v3071_v18, %v1910_v25 }
 0x78a   :  { %1912 = vst [vmem:[#allocation2 + $0x6] sm:$0x1] %v3650_v26  ;;  %1913 = vst [vmem:[#allocation2 + $0x9] sm:$0x1] %v3650_v26  ;;  %v1914_v23 = vpack.c.bf16 %v3650_v26, %v3650_v26 }
 0x78c   :  { %2108 = vmatmul.mubr.bf16.vlgmr.msra.gmra.mrb[28].mxu0 %v1914_v23  ;;  %2861 = vmatmul.mubr.bf16.vlgmr.msra.gmra.mrb[28].mxu1 %v1914_v23 }
 0x78d   :  { %2683 = vmatpush3.bf16.msra.mxu0 %v2989_v27 }
 0x78e   :  { %2684 = vmatprep.subr.bf16.mxu0 %v2990_v29 }
 0x791   :  { %2685 = vmatpush3.bf16.msra.mxu0 %v2991_v32 }
 0x792   :  { %2686 = vmatprep.subr.bf16.mxu0 %v2992_v35 }
 0x795   :  { %2687 = vmatpush3.bf16.msra.mxu0 %v2993_v38 }
 0x796   :  { %2688 = vmatprep.subr.bf16.mxu0 %v2994_v42 }
 0x799   :  { %2689 = vmatpush3.bf16.msra.mxu0 %v2995_v43 }
 0x79a   :  { %2690 = vmatprep.subr.bf16.mxu0 %v2996_v44 }
 0x79d   :  { %2691 = vmatpush3.bf16.msra.mxu0 %v2997_v45 }
 0x79e   :  { %2692 = vmatprep.subr.bf16.mxu0 %v2998_v3 }
 0x7a1   :  { %2693 = vmatpush3.bf16.msra.mxu0 %v2999_v4 }
 0x7a2   :  { %2694 = vmatprep.subr.bf16.mxu0 %v3000_v5 }
 0x7a5   :  { %2695 = vmatpush3.bf16.msra.mxu0 %v3001_v6 }
 0x7a6   :  { %2696 = vmatprep.subr.bf16.mxu0 %v3002_v7 }
 0x7a9   :  { %2697 = vmatpush3.bf16.msra.mxu0 %v3003_v11 }
 0x85f   :  { %v2109_v47 = vpop.f32.mrb[28].mxu0  ;;  %v2150_v51 = vpop.f32.mrb[28].mxu1 }
 0x860   :  { %v2110_v52 = vadd.f32 %v2109_v47, %v3376_v40  ;;  %v2111_v53 = vpop.f32.mrb[29].mxu0  ;;  %v2862_v54 = vpop.f32.mrb[29].mxu1  ;;  %v2151_v10 = vadd.f32 %v2150_v51, %v3382_v58 }
 0x861   :  { %v2113_v55 = vpop.f32.mrb[30].mxu0  ;;  %v2153_v56 = vpop.f32.mrb[30].mxu1  ;;  %v2112_v61 = vadd.f32 %v2111_v53, %v3379_v48 }
 0x862   :  { %v2591_v57 = vmul.f32 -1.442695, %v2110_v52  ;;  %v2114_v59 = vpop.f32.mrb[31].mxu0  ;;  %v2863_v60 = vpop.f32.mrb[31].mxu1 }
 0x863   :  { %v2592_v1 = vmul.f32 -1.442695, %v2112_v61 }
 0x864   :  { %3074 = vpow2.f32 %v2591_v57 }
 0x865   :  { %3076 = vpow2.f32 %v2592_v1 }
 0x86e   :  { %v3075_v28 = vpop.eup %3074 }
 0x86f   :  { %v2159_v30 = vadd.f32 1.0, %v3075_v28  ;;  %v3077_v8 = vpop.eup %3076 }
 0x870   :  { %v2165_v50 = vadd.f32 1.0, %v3077_v8 }
 0x871   :  { %3078 = vrcp.f32 %v2159_v30 }
 0x87b   :  { %v3079_v13 = vpop.eup %3078 }
 0x87c   :  { %v2168_v40 = vmul.f32 %v3079_v13, %v2151_v10 }
 0x87e   :  { %v2169_v49 = vadd.f32 %v3084_v46, %v2168_v40 }
 0x880   :  { %3080 = vtanh.f32 %v2169_v49 }
 0x881   :  { %3082 = vrcp.f32 %v2165_v50 }
 0x88a   :  { %v3081_v31 = vpop.eup %3080 }
 0x88b   :  { %v2171_v48 = vsub.f32 %v3650_v26, %v3081_v31  ;;  %v3083_v33 = vpop.eup %3082 }
 0x88d   :  { %v2172_v34 = vmul.f32 %v3083_v33, %v2171_v48 }
 0x88f   :  { %v2173_v36 = vadd.f32 %v3081_v31, %v2172_v34 }
 0x891   :  { %2174 = vst [vmem:[#allocation2 + $0x7] sm:$0x1] %v2173_v36  ;;  %2175 = vst [vmem:[#allocation2 + $0x8] sm:$0x1] %v2173_v36 }
 0x892   :  { %2176 = vst [vmem:[#allocation10] sm:$0x1] %v2173_v36 }
 0x898   :  { %v2178_v58 = vld [vmem:[#allocation2 + $0x8] sm:$0xff]  ;;  %v2177_v37 = vld [vmem:[#allocation2] sm:$0xff] }
 0x899   :  { %v2180_v39 = vpack.c.bf16 %v2178_v58, %v2178_v58  ;;  %v2179_v41 = vpack.c.bf16 %v2177_v37, %v2177_v37 }
 0x89b   :  { %2346 = vmatprep.mubr.bf16.mxu0 %v2180_v39 }
 0x89c   :  { %2347 = vmatmul.mubr.bf16.vlgmr.msra.gmra.mrb[32].mxu0 %v2179_v41 }
 0x89d   :  { %3162 = shalt.err (!%p3159_p0)
}
 0x89e   :  { %s3163_s1 = scalar_lea.hbm %s3695_s5, 16 }
 0x89f   :  { %p3164_p1 = scmp.ne.s32.totalorder %s3695_s5, %s3163_s1  ;;  %p3167_p2 = scmp.lt.u32.totalorder %s3163_s1, %s3695_s5 }
 0x8a1   :  { %p3169_p3 = pnand %p3167_p2, %p3164_p1 }
 0x8a3   :  { %3172 = shalt.err (!%p3169_p3)
}
 0x8a4   :  { %2374 = dma.vmem_to_hbm [thread:$0]  %s2372_s13, 16, %s3695_s5, [#allocation11]   ;;  %v2593_v9 = vld [vmem:[%s3692_s2 + $0x3] ss:$0 sm:$0xff] }
 0x8a5   :  { %s3214_s26 = smov [#allocation9]  }
 0x8a6   :  { %s2361_s27 = sshll.u32 %s3214_s26, 4  ;;  %s2362_s27 = int_to_ptr.vmem [resolvable:$true] %s2361_s27 }
 0x8a7   :  { %s3173_s28 = scalar_lea.vmem %s2362_s27, 128  ;;  %p3178_p5 = scmp.lt.s32.totalorder %s2362_s27, %s2362_s27 }
 0x8a8   :  { %p3174_p4 = scmp.ne.s32.totalorder %s2362_s27, %s3173_s28  ;;  %p3179_p6 = scmp.lt.s32.totalorder %s3173_s28, %s3173_s28 }
 0x8aa   :  { %p3180_p7 = por %p3179_p6, %p3178_p5 }
 0x8ac   :  { %p3181_p8 = pnand %p3180_p7, %p3174_p4 }
 0x96f   :  { %v2698_v63 = vpop.f32.mrb[32].mxu0 }
 0x970   :  { %v2699_v12 = vpop.f32.mrb[33].mxu0 }
 0x971   :  { %v2700_v15 = vadd.f32 %v2699_v12, %v2698_v63  ;;  %v2701_v16 = vpop.f32.mrb[34].mxu0 }
 0x972   :  { %v2702_v17 = vpop.f32.mrb[35].mxu0 }
 0x973   :  { %v2349_v0 = vadd.f32 %v2700_v15, %v2593_v9 }
 0x975   :  { %2354 = vst [vmem:[#allocation9] sm:$0xff] %v2349_v0 }
 0x976   :  { %3184 = shalt.err (!%p3181_p8)
}
 0x977   :  { %s3185_s2 = scalar_lea.hbm %s3694_s4, 128 }
 0x978   :  { %p3186_p9 = scmp.ne.s32.totalorder %s3694_s4, %s3185_s2  ;;  %p3189_p10 = scmp.lt.u32.totalorder %s3185_s2, %s3694_s4 }
 0x97a   :  { %p3191_p11 = pnand %p3189_p10, %p3186_p9 }
 0x97c   :  { %3194 = shalt.err (!%p3191_p11)
}
 0x97d   :  { %2364 = dma.vmem_to_hbm [thread:$0]  %s2362_s27, 128, %s3694_s4, [#allocation5]  }
 0x97e   :  { %3199 = dma.done.wait [#allocation5], 128  }
 0x97f   :  { %3200 = vsyncadd [#allocation5], 4294967168 }
 0x980   :  { %3201 = dma.done.wait [#allocation11], 16  }
 0x981   :  { %3202 = vsyncadd [#allocation11], 4294967280 }
 0x982   :  { %2381 = vsyncpa [#allocation4], 1 }
 0x983   :  { %2382 = vsyncpa [#allocation7], 1 }
 0x984   :  { %2383 = vsyncpa [#allocation5], 1 }
 0x985   :  { %2384 = vsyncpa [#allocation11], 1 }

</bundles_post_ra>
